<compile_context>
chip_gen: v7x
topology: tpu7x:2x2x1
jax: 0.10.0
libtpu: 0.0.40
codegen_flags: <defaults>
</compile_context>

<pallas_src>
import math
import functools

import jax
import jax.numpy as jnp
from jax.experimental import pallas as pl
from jax.experimental.pallas import tpu as pltpu

# Small LIMU-BERT-style hyper-parameters (structure matches the 'base' config).
FEATURE_NUM = 4      # cfg.feature_num
SEQ_LEN = 8          # cfg.seq_len
HIDDEN = 32          # cfg.hidden   (module declares 72; shrunk for the demo)
HIDDEN_FF = 64       # cfg.hidden_ff
N_HEADS = 4          # cfg.n_heads
N_LAYERS = 2         # cfg.n_layers (weights shared across layers)
LN_EPS = 1e-12       # TF-style LayerNorm epsilon (inside the sqrt)

LANE = 128           # TPU lane width (packed-vector row width / padded output)
MAX_B_BLK = 64       # batch elements per grid step (sweepable)


def _erf(z):
    # Abramowitz & Stegun 7.1.26 (|err| < 1.5e-7).  erf has no guaranteed
    # Mosaic lowering; the exp() lands on the EUP slot, the few extra VALU ops
    # are negligible at these shapes and keep the exact-gelu tolerance safe.
    a1, a2, a3, a4, a5 = 0.254829592, -0.284496736, 1.421413741, -1.453152027, 1.061405429
    p = 0.3275911
    sgn = jnp.where(z >= 0.0, 1.0, -1.0)
    az = jnp.abs(z)
    t = 1.0 / (1.0 + p * az)
    poly = ((((a5 * t + a4) * t + a3) * t + a2) * t + a1) * t
    return sgn * (1.0 - poly * jnp.exp(-az * az))


def _gelu(x):
    # LIMU-BERT gelu: x * 0.5 * (1 + erf(x / sqrt(2)))
    return x * 0.5 * (1.0 + _erf(x * (1.0 / math.sqrt(2.0))))


def _layernorm(v, g, b):
    u = jnp.mean(v, axis=-1, keepdims=True)
    s = jnp.mean((v - u) ** 2, axis=-1, keepdims=True)
    return g * ((v - u) / jnp.sqrt(s + LN_EPS)) + b


def limu_transformer_kernel(
    x_ref, pos_ref, vec_ref, wlin_ref, wqkv_ref, wproj_ref, wff1_ref, wff2_ref,
    out_ref, *, n_layers, n_heads, b_blk, seq_len, hidden, hidden_ff):
    rows = b_blk * seq_len
    d_head = hidden // n_heads
    scale = 1.0 / math.sqrt(d_head)

    x = x_ref[...]               # (rows, F)   whole batch block as a row slab
    pos = pos_ref[...]           # (rows, H)   pre-tiled positional embedding
    vecs = vec_ref[...]          # (11, 128)   packed bias / LayerNorm vectors

    # Unpack the packed small vectors (static slices, broadcast over rows).
    b_lin  = vecs[0:1,   :hidden]
    g_emb  = vecs[1:2,   :hidden]
    b_emb  = vecs[2:3,   :hidden]
    b_qkv  = vecs[3:4,   :3 * hidden]
    b_proj = vecs[4:5,   :hidden]
    g1     = vecs[5:6,   :hidden]
    b1     = vecs[6:7,   :hidden]
    b_ff1  = vecs[7:8,   :hidden_ff]
    b_ff2  = vecs[8:9,   :hidden]
    g2     = vecs[9:10,  :hidden]
    b2     = vecs[10:11, :hidden]

    w_lin  = wlin_ref[...]       # (F, H)
    w_qkv  = wqkv_ref[...]       # (H, 3H)  fused [Q | K | V]
    w_proj = wproj_ref[...]      # (H, H)
    w_ff1  = wff1_ref[...]       # (H, HFF)
    w_ff2  = wff2_ref[...]       # (HFF, H)

    # --- Embedding: factorized linear + emb LayerNorm + positional embed ---
    e = jnp.dot(x, w_lin, preferred_element_type=jnp.float32) + b_lin
    h = _layernorm(e, g_emb, b_emb) + pos                  # (rows, H)

    # --- Parameter-shared transformer blocks (static unroll) ---
    for _ in range(n_layers):
        # Fused QKV: one MXU matmul instead of three.
        qkv = jnp.dot(h, w_qkv, preferred_element_type=jnp.float32) + b_qkv
        # Leading-dim split only (minor dim unchanged) -> layout no-op.
        qkv3 = qkv.reshape(b_blk, seq_len, 3 * hidden)

        head_ctx = []
        for hd in range(n_heads):
            q = qkv3[:, :, hd * d_head:(hd + 1) * d_head]
            k = qkv3[:, :, hidden + hd * d_head:hidden + (hd + 1) * d_head]
            v = qkv3[:, :, 2 * hidden + hd * d_head:2 * hidden + (hd + 1) * d_head]
            # Batched over the batch block (single leading batch dim).
            sc = jnp.einsum('bsd,btd->bst', q, k,
                            preferred_element_type=jnp.float32) * scale
            sc = sc - jnp.max(sc, axis=-1, keepdims=True)
            p = jnp.exp(sc)
            attn = p / jnp.sum(p, axis=-1, keepdims=True)
            head_ctx.append(jnp.einsum('bst,btd->bsd', attn, v,
                                       preferred_element_type=jnp.float32))
        ctx = jnp.concatenate(head_ctx, axis=-1).reshape(rows, hidden)

        proj = jnp.dot(ctx, w_proj, preferred_element_type=jnp.float32) + b_proj
        h1 = _layernorm(ctx + proj, g1, b1)

        ff = jnp.dot(h1, w_ff1, preferred_element_type=jnp.float32) + b_ff1
        ff = jnp.dot(_gelu(ff), w_ff2, preferred_element_type=jnp.float32) + b_ff2
        h = _layernorm(h1 + ff, g2, b2)

    # Lane-dense store: pad H up to the 128-lane output block (unmasked vst);
    # the wrapper slices the valid H columns back out.
    pad_w = out_ref.shape[-1] - hidden
    if pad_w:
        h = jnp.concatenate([h, jnp.zeros((rows, pad_w), jnp.float32)], axis=-1)
    out_ref[...] = h.astype(out_ref.dtype)


def _pad_lane(v, width):
    return jnp.pad(v, ((0, 0), (0, width - v.shape[1])))


def _forward_single(x, params):
    B, S, F = x.shape
    H = params["w_lin"].shape[1]
    HFF = params["w_ff1"].shape[1]

    # Batch blocking: whole batch per grid step when small; pad to a multiple.
    b_blk = min(B, MAX_B_BLK)
    n_blocks = pl.cdiv(B, b_blk)
    b_pad = n_blocks * b_blk
    if b_pad != B:
        x = jnp.concatenate([x, jnp.zeros((b_pad - B, S, F), x.dtype)], axis=0)
    rows = b_blk * S

    x2 = x.reshape(b_pad * S, F).astype(jnp.float32)        # row-slab input

    # Fused QKV weight / bias (mathematically identical to separate Q, K, V).
    w_qkv = jnp.concatenate([params["w_q"], params["w_k"], params["w_v"]], axis=1)
    b_qkv = jnp.concatenate([params["b_q"], params["b_k"], params["b_v"]], axis=1)

    # Positional embedding pre-tiled to the row-slab layout.
    pos_tiled = jnp.tile(params["pos_embed"], (b_blk, 1))    # (rows, H)

    # Pack all small bias / LayerNorm vectors into one (11, 128) buffer:
    # one DMA + one double-buffered VMEM allocation instead of 13.
    vec_w = ((max(LANE, 3 * H, HFF) + LANE - 1) // LANE) * LANE
    vec_rows = [params["b_lin"], params["g_emb"], params["b_emb"], b_qkv,
                params["b_proj"], params["g_1"], params["b_1"],
                params["b_ff1"], params["b_ff2"], params["g_2"], params["b_2"]]
    vecs = jnp.concatenate([_pad_lane(v, vec_w) for v in vec_rows], axis=0)

    mats = [params["w_lin"], w_qkv, params["w_proj"],
            params["w_ff1"], params["w_ff2"]]

    out_lanes = ((H + LANE - 1) // LANE) * LANE              # lane-dense output

    def const_spec(p):
        return pl.BlockSpec(p.shape, lambda b: (0,) * p.ndim)

    kernel = functools.partial(
        limu_transformer_kernel, n_layers=N_LAYERS, n_heads=N_HEADS,
        b_blk=b_blk, seq_len=S, hidden=H, hidden_ff=HFF)

    out = pl.pallas_call(
        kernel,
        out_shape=jax.ShapeDtypeStruct((b_pad * S, out_lanes), jnp.float32),
        grid_spec=pltpu.PrefetchScalarGridSpec(
            num_scalar_prefetch=0,
            grid=(n_blocks,),
            in_specs=[pl.BlockSpec((rows, F), lambda b: (b, 0)),
                      const_spec(pos_tiled),
                      const_spec(vecs)] + [const_spec(m) for m in mats],
            out_specs=pl.BlockSpec((rows, out_lanes), lambda b: (b, 0)),
        ),
        compiler_params=pltpu.CompilerParams(
            dimension_semantics=("parallel",),   # independent batch blocks
            vmem_limit_bytes=32 * 1024 * 1024),  # headroom on v7x's 64 MiB VMEM
    )(x2, pos_tiled, vecs, *mats)

    return out[:B * S, :H].reshape(B, S, H)


def clip_vision_tower_forward(images, params):
    """Mirrors CLIPVisionTower.forward: accepts a tensor or a list of tensors."""
    if isinstance(images, (list, tuple)):
        return [_forward_single(im, params) for im in images]
    return _forward_single(images, params)


def init_params(key):
    """Deterministic synthetic weights (nn.Linear-style uniform init)."""
    ks = jax.random.split(key, 8)

    def lin(k, fan_in, fan_out):
        bound = 1.0 / math.sqrt(fan_in)
        kw, kb = jax.random.split(k)
        w = jax.random.uniform(kw, (fan_in, fan_out), jnp.float32, -bound, bound)
        b = jax.random.uniform(kb, (1, fan_out), jnp.float32, -bound, bound)
        return w, b

    p = {}
    p["w_lin"], p["b_lin"] = lin(ks[0], FEATURE_NUM, HIDDEN)
    p["pos_embed"] = 0.02 * jax.random.normal(ks[1], (SEQ_LEN, HIDDEN), jnp.float32)
    p["w_q"], p["b_q"] = lin(ks[2], HIDDEN, HIDDEN)
    p["w_k"], p["b_k"] = lin(ks[3], HIDDEN, HIDDEN)
    p["w_v"], p["b_v"] = lin(ks[4], HIDDEN, HIDDEN)
    p["w_proj"], p["b_proj"] = lin(ks[5], HIDDEN, HIDDEN)
    p["w_ff1"], p["b_ff1"] = lin(ks[6], HIDDEN, HIDDEN_FF)
    p["w_ff2"], p["b_ff2"] = lin(ks[7], HIDDEN_FF, HIDDEN)
    for name in ("emb", "1", "2"):
        p[f"g_{name}"] = jnp.ones((1, HIDDEN), jnp.float32)
        p[f"b_{name}"] = jnp.zeros((1, HIDDEN), jnp.float32)
    return p


def reference_forward(x, p):
    """Pure-JAX reference mirroring the PyTorch LIMU-BERT Transformer."""
    def ln(v, g, b):
        u = v.mean(-1, keepdims=True)
        s = ((v - u) ** 2).mean(-1, keepdims=True)
        return g * ((v - u) / jnp.sqrt(s + LN_EPS)) + b

    B, S, _ = x.shape
    d_head = HIDDEN // N_HEADS
    e = x @ p["w_lin"] + p["b_lin"]
    e = ln(e, p["g_emb"], p["b_emb"])
    h = e + p["pos_embed"][None]
    for _ in range(N_LAYERS):
        q = h @ p["w_q"] + p["b_q"]
        k = h @ p["w_k"] + p["b_k"]
        v = h @ p["w_v"] + p["b_v"]
        qh = q.reshape(B, S, N_HEADS, d_head).transpose(0, 2, 1, 3)
        kh = k.reshape(B, S, N_HEADS, d_head).transpose(0, 2, 1, 3)
        vh = v.reshape(B, S, N_HEADS, d_head).transpose(0, 2, 1, 3)
        sc = (qh @ kh.transpose(0, 1, 3, 2)) / math.sqrt(d_head)
        a = jax.nn.softmax(sc, axis=-1)
        ctx = (a @ vh).transpose(0, 2, 1, 3).reshape(B, S, HIDDEN)
        h1 = ln(ctx + (ctx @ p["w_proj"] + p["b_proj"]), p["g_1"], p["b_1"])
        ff = jax.nn.gelu(h1 @ p["w_ff1"] + p["b_ff1"], approximate=False)
        ff = ff @ p["w_ff2"] + p["b_ff2"]
        h = ln(h1 + ff, p["g_2"], p["b_2"])
    return h


if __name__ == "__main__":
    key = jax.random.PRNGKey(0)
    kx, kp = jax.random.split(key)
    x = jax.random.normal(kx, (2, SEQ_LEN, FEATURE_NUM), jnp.float32)  # (B, S, F)
    params = init_params(kp)

    out = clip_vision_tower_forward(x, params)
    out = jax.block_until_ready(out)

    ref = reference_forward(x, params)
    assert out.shape == (2, SEQ_LEN, HIDDEN)
    assert jnp.allclose(out, ref, atol=2e-3, rtol=2e-3), \
        float(jnp.max(jnp.abs(out - ref)))
    print("KERNEL_OK")
</pallas_src>

<mosaic_0001>
module attributes {stable_mosaic.version = 11 : i64} {
  func.func @limu_transformer_kernel(%arg0: i32, %arg1: memref<16x4xf32, #tpu.memory_space<vmem>>, %arg2: memref<16x32xf32, #tpu.memory_space<vmem>>, %arg3: memref<11x128xf32, #tpu.memory_space<vmem>>, %arg4: memref<4x32xf32, #tpu.memory_space<vmem>>, %arg5: memref<32x96xf32, #tpu.memory_space<vmem>>, %arg6: memref<32x32xf32, #tpu.memory_space<vmem>>, %arg7: memref<32x64xf32, #tpu.memory_space<vmem>>, %arg8: memref<64x32xf32, #tpu.memory_space<vmem>>, %arg9: memref<16x128xf32, #tpu.memory_space<vmem>>) attributes {dimension_semantics = [#tpu.dimension_semantics<parallel>], iteration_bounds = array<i64: 1>, scalar_prefetch = 0 : i64, scratch_operands = 0 : i64, tpu.core_type = #tpu.core_type<tc>, window_params = [{transform_indices = @transform_0, window_bounds = array<i64: 16, 4>}, {pipeline_mode = #tpu.pipeline_mode<synchronous>, transform_indices = @transform_1, window_bounds = array<i64: 16, 32>}, {pipeline_mode = #tpu.pipeline_mode<synchronous>, transform_indices = @transform_2, window_bounds = array<i64: 11, 128>}, {pipeline_mode = #tpu.pipeline_mode<synchronous>, transform_indices = @transform_3, window_bounds = array<i64: 4, 32>}, {pipeline_mode = #tpu.pipeline_mode<synchronous>, transform_indices = @transform_4, window_bounds = array<i64: 32, 96>}, {pipeline_mode = #tpu.pipeline_mode<synchronous>, transform_indices = @transform_5, window_bounds = array<i64: 32, 32>}, {pipeline_mode = #tpu.pipeline_mode<synchronous>, transform_indices = @transform_6, window_bounds = array<i64: 32, 64>}, {pipeline_mode = #tpu.pipeline_mode<synchronous>, transform_indices = @transform_7, window_bounds = array<i64: 64, 32>}, {transform_indices = @transform_8, window_bounds = array<i64: 16, 128>}]} {
    %c0 = arith.constant 0 : index
    %c0_0 = arith.constant 0 : index
    %0 = vector.load %arg1[%c0, %c0_0] : memref<16x4xf32, #tpu.memory_space<vmem>>, vector<16x4xf32>
    %c0_1 = arith.constant 0 : index
    %c0_2 = arith.constant 0 : index
    %1 = vector.load %arg2[%c0_1, %c0_2] : memref<16x32xf32, #tpu.memory_space<vmem>>, vector<16x32xf32>
    %c0_3 = arith.constant 0 : index
    %c0_4 = arith.constant 0 : index
    %2 = vector.load %arg3[%c0_3, %c0_4] : memref<11x128xf32, #tpu.memory_space<vmem>>, vector<11x128xf32>
    %3 = vector.extract_strided_slice %2 {offsets = [0, 0], sizes = [1, 32], strides = [1, 1]} : vector<11x128xf32> to vector<1x32xf32>
    %4 = vector.extract_strided_slice %2 {offsets = [1, 0], sizes = [1, 32], strides = [1, 1]} : vector<11x128xf32> to vector<1x32xf32>
    %5 = vector.extract_strided_slice %2 {offsets = [2, 0], sizes = [1, 32], strides = [1, 1]} : vector<11x128xf32> to vector<1x32xf32>
    %6 = vector.extract_strided_slice %2 {offsets = [3, 0], sizes = [1, 96], strides = [1, 1]} : vector<11x128xf32> to vector<1x96xf32>
    %7 = vector.extract_strided_slice %2 {offsets = [4, 0], sizes = [1, 32], strides = [1, 1]} : vector<11x128xf32> to vector<1x32xf32>
    %8 = vector.extract_strided_slice %2 {offsets = [5, 0], sizes = [1, 32], strides = [1, 1]} : vector<11x128xf32> to vector<1x32xf32>
    %9 = vector.extract_strided_slice %2 {offsets = [6, 0], sizes = [1, 32], strides = [1, 1]} : vector<11x128xf32> to vector<1x32xf32>
    %10 = vector.extract_strided_slice %2 {offsets = [7, 0], sizes = [1, 64], strides = [1, 1]} : vector<11x128xf32> to vector<1x64xf32>
    %11 = vector.extract_strided_slice %2 {offsets = [8, 0], sizes = [1, 32], strides = [1, 1]} : vector<11x128xf32> to vector<1x32xf32>
    %12 = vector.extract_strided_slice %2 {offsets = [9, 0], sizes = [1, 32], strides = [1, 1]} : vector<11x128xf32> to vector<1x32xf32>
    %13 = vector.extract_strided_slice %2 {offsets = [10, 0], sizes = [1, 32], strides = [1, 1]} : vector<11x128xf32> to vector<1x32xf32>
    %c0_5 = arith.constant 0 : index
    %c0_6 = arith.constant 0 : index
    %14 = vector.load %arg4[%c0_5, %c0_6] : memref<4x32xf32, #tpu.memory_space<vmem>>, vector<4x32xf32>
    %c0_7 = arith.constant 0 : index
    %c0_8 = arith.constant 0 : index
    %15 = vector.load %arg5[%c0_7, %c0_8] : memref<32x96xf32, #tpu.memory_space<vmem>>, vector<32x96xf32>
    %c0_9 = arith.constant 0 : index
    %c0_10 = arith.constant 0 : index
    %16 = vector.load %arg6[%c0_9, %c0_10] : memref<32x32xf32, #tpu.memory_space<vmem>>, vector<32x32xf32>
    %c0_11 = arith.constant 0 : index
    %c0_12 = arith.constant 0 : index
    %17 = vector.load %arg7[%c0_11, %c0_12] : memref<32x64xf32, #tpu.memory_space<vmem>>, vector<32x64xf32>
    %c0_13 = arith.constant 0 : index
    %c0_14 = arith.constant 0 : index
    %18 = vector.load %arg8[%c0_13, %c0_14] : memref<64x32xf32, #tpu.memory_space<vmem>>, vector<64x32xf32>
    %cst = arith.constant dense<0.000000e+00> : vector<16x32xf32>
    %19 = tpu.matmul %0, %14, %cst {dimension_numbers = #tpu.dot_dimension_numbers<[1], [0], [0], [1], [0, 0, 1, 1], [], []>} : vector<16x4xf32>, vector<4x32xf32>, vector<16x32xf32> -> vector<16x32xf32>
    %20 = vector.broadcast %3 : vector<1x32xf32> to vector<16x32xf32>
    %21 = arith.addf %19, %20 : vector<16x32xf32>
    %cst_15 = arith.constant dense<0.000000e+00> : vector<16xf32>
    %22 = vector.multi_reduction <add>, %21, %cst_15 [1] : vector<16x32xf32> to vector<16xf32>
    %23 = vector.shape_cast %22 : vector<16xf32> to vector<16x1xf32>
    %cst_16 = arith.constant 3.200000e+01 : f32
    %24 = vector.broadcast %cst_16 : f32 to vector<16x1xf32>
    %25 = arith.divf %23, %24 : vector<16x1xf32>
    %26 = vector.broadcast %25 : vector<16x1xf32> to vector<16x32xf32>
    %27 = arith.subf %21, %26 : vector<16x32xf32>
    %28 = arith.mulf %27, %27 : vector<16x32xf32>
    %cst_17 = arith.constant dense<0.000000e+00> : vector<16xf32>
    %29 = vector.multi_reduction <add>, %28, %cst_17 [1] : vector<16x32xf32> to vector<16xf32>
    %30 = vector.shape_cast %29 : vector<16xf32> to vector<16x1xf32>
    %cst_18 = arith.constant 3.200000e+01 : f32
    %31 = vector.broadcast %cst_18 : f32 to vector<16x1xf32>
    %32 = arith.divf %30, %31 : vector<16x1xf32>
    %33 = vector.broadcast %25 : vector<16x1xf32> to vector<16x32xf32>
    %34 = arith.subf %21, %33 : vector<16x32xf32>
    %cst_19 = arith.constant 9.99999996E-13 : f32
    %35 = vector.broadcast %cst_19 : f32 to vector<16x1xf32>
    %36 = arith.addf %32, %35 : vector<16x1xf32>
    %37 = math.sqrt %36 : vector<16x1xf32>
    %38 = vector.broadcast %37 : vector<16x1xf32> to vector<16x32xf32>
    %39 = arith.divf %34, %38 : vector<16x32xf32>
    %40 = vector.broadcast %4 : vector<1x32xf32> to vector<16x32xf32>
    %41 = arith.mulf %40, %39 : vector<16x32xf32>
    %42 = vector.broadcast %5 : vector<1x32xf32> to vector<16x32xf32>
    %43 = arith.addf %41, %42 : vector<16x32xf32>
    %44 = arith.addf %43, %1 : vector<16x32xf32>
    %cst_20 = arith.constant dense<0.000000e+00> : vector<16x96xf32>
    %45 = tpu.matmul %44, %15, %cst_20 {dimension_numbers = #tpu.dot_dimension_numbers<[1], [0], [0], [1], [0, 0, 1, 1], [], []>} : vector<16x32xf32>, vector<32x96xf32>, vector<16x96xf32> -> vector<16x96xf32>
    %46 = vector.broadcast %6 : vector<1x96xf32> to vector<16x96xf32>
    %47 = arith.addf %45, %46 : vector<16x96xf32>
    %48 = vector.shape_cast %47 : vector<16x96xf32> to vector<2x8x96xf32>
    %49 = vector.extract_strided_slice %48 {offsets = [0, 0, 0], sizes = [2, 8, 8], strides = [1, 1, 1]} : vector<2x8x96xf32> to vector<2x8x8xf32>
    %50 = vector.extract_strided_slice %48 {offsets = [0, 0, 32], sizes = [2, 8, 8], strides = [1, 1, 1]} : vector<2x8x96xf32> to vector<2x8x8xf32>
    %51 = vector.extract_strided_slice %48 {offsets = [0, 0, 64], sizes = [2, 8, 8], strides = [1, 1, 1]} : vector<2x8x96xf32> to vector<2x8x8xf32>
    "tpu.trace_start"() <{level = 10 : i32, message = "bsd,btd->bst"}> : () -> ()
    %cst_21 = arith.constant dense<0.000000e+00> : vector<2x8x8xf32>
    %52 = tpu.matmul %49, %50, %cst_21 {dimension_numbers = #tpu.dot_dimension_numbers<[2], [2], [1], [1], [0, 0, 0, 1, 1, 1], [0], [0]>} : vector<2x8x8xf32>, vector<2x8x8xf32>, vector<2x8x8xf32> -> vector<2x8x8xf32>
    "tpu.trace_stop"() : () -> ()
    %cst_22 = arith.constant 0.353553385 : f32
    %53 = vector.broadcast %cst_22 : f32 to vector<2x8x8xf32>
    %54 = arith.mulf %52, %53 : vector<2x8x8xf32>
    %cst_23 = arith.constant dense<0xFF800000> : vector<2x8xf32>
    %55 = vector.multi_reduction <maximumf>, %54, %cst_23 [2] : vector<2x8x8xf32> to vector<2x8xf32>
    %56 = vector.shape_cast %55 : vector<2x8xf32> to vector<2x8x1xf32>
    %57 = vector.broadcast %56 : vector<2x8x1xf32> to vector<2x8x8xf32>
    %58 = arith.subf %54, %57 : vector<2x8x8xf32>
    %59 = math.exp %58 : vector<2x8x8xf32>
    %cst_24 = arith.constant dense<0.000000e+00> : vector<2x8xf32>
    %60 = vector.multi_reduction <add>, %59, %cst_24 [2] : vector<2x8x8xf32> to vector<2x8xf32>
    %61 = vector.shape_cast %60 : vector<2x8xf32> to vector<2x8x1xf32>
    %62 = vector.broadcast %61 : vector<2x8x1xf32> to vector<2x8x8xf32>
    %63 = arith.divf %59, %62 : vector<2x8x8xf32>
    "tpu.trace_start"() <{level = 10 : i32, message = "bst,btd->bsd"}> : () -> ()
    %cst_25 = arith.constant dense<0.000000e+00> : vector<2x8x8xf32>
    %64 = tpu.matmul %63, %51, %cst_25 {dimension_numbers = #tpu.dot_dimension_numbers<[2], [1], [1], [2], [0, 0, 0, 1, 1, 2], [0], [0]>} : vector<2x8x8xf32>, vector<2x8x8xf32>, vector<2x8x8xf32> -> vector<2x8x8xf32>
    "tpu.trace_stop"() : () -> ()
    %65 = vector.extract_strided_slice %48 {offsets = [0, 0, 8], sizes = [2, 8, 8], strides = [1, 1, 1]} : vector<2x8x96xf32> to vector<2x8x8xf32>
    %66 = vector.extract_strided_slice %48 {offsets = [0, 0, 40], sizes = [2, 8, 8], strides = [1, 1, 1]} : vector<2x8x96xf32> to vector<2x8x8xf32>
    %67 = vector.extract_strided_slice %48 {offsets = [0, 0, 72], sizes = [2, 8, 8], strides = [1, 1, 1]} : vector<2x8x96xf32> to vector<2x8x8xf32>
    "tpu.trace_start"() <{level = 10 : i32, message = "bsd,btd->bst"}> : () -> ()
    %cst_26 = arith.constant dense<0.000000e+00> : vector<2x8x8xf32>
    %68 = tpu.matmul %65, %66, %cst_26 {dimension_numbers = #tpu.dot_dimension_numbers<[2], [2], [1], [1], [0, 0, 0, 1, 1, 1], [0], [0]>} : vector<2x8x8xf32>, vector<2x8x8xf32>, vector<2x8x8xf32> -> vector<2x8x8xf32>
    "tpu.trace_stop"() : () -> ()
    %cst_27 = arith.constant 0.353553385 : f32
    %69 = vector.broadcast %cst_27 : f32 to vector<2x8x8xf32>
    %70 = arith.mulf %68, %69 : vector<2x8x8xf32>
    %cst_28 = arith.constant dense<0xFF800000> : vector<2x8xf32>
    %71 = vector.multi_reduction <maximumf>, %70, %cst_28 [2] : vector<2x8x8xf32> to vector<2x8xf32>
    %72 = vector.shape_cast %71 : vector<2x8xf32> to vector<2x8x1xf32>
    %73 = vector.broadcast %72 : vector<2x8x1xf32> to vector<2x8x8xf32>
    %74 = arith.subf %70, %73 : vector<2x8x8xf32>
    %75 = math.exp %74 : vector<2x8x8xf32>
    %cst_29 = arith.constant dense<0.000000e+00> : vector<2x8xf32>
    %76 = vector.multi_reduction <add>, %75, %cst_29 [2] : vector<2x8x8xf32> to vector<2x8xf32>
    %77 = vector.shape_cast %76 : vector<2x8xf32> to vector<2x8x1xf32>
    %78 = vector.broadcast %77 : vector<2x8x1xf32> to vector<2x8x8xf32>
    %79 = arith.divf %75, %78 : vector<2x8x8xf32>
    "tpu.trace_start"() <{level = 10 : i32, message = "bst,btd->bsd"}> : () -> ()
    %cst_30 = arith.constant dense<0.000000e+00> : vector<2x8x8xf32>
    %80 = tpu.matmul %79, %67, %cst_30 {dimension_numbers = #tpu.dot_dimension_numbers<[2], [1], [1], [2], [0, 0, 0, 1, 1, 2], [0], [0]>} : vector<2x8x8xf32>, vector<2x8x8xf32>, vector<2x8x8xf32> -> vector<2x8x8xf32>
    "tpu.trace_stop"() : () -> ()
    %81 = vector.extract_strided_slice %48 {offsets = [0, 0, 16], sizes = [2, 8, 8], strides = [1, 1, 1]} : vector<2x8x96xf32> to vector<2x8x8xf32>
    %82 = vector.extract_strided_slice %48 {offsets = [0, 0, 48], sizes = [2, 8, 8], strides = [1, 1, 1]} : vector<2x8x96xf32> to vector<2x8x8xf32>
    %83 = vector.extract_strided_slice %48 {offsets = [0, 0, 80], sizes = [2, 8, 8], strides = [1, 1, 1]} : vector<2x8x96xf32> to vector<2x8x8xf32>
    "tpu.trace_start"() <{level = 10 : i32, message = "bsd,btd->bst"}> : () -> ()
    %cst_31 = arith.constant dense<0.000000e+00> : vector<2x8x8xf32>
    %84 = tpu.matmul %81, %82, %cst_31 {dimension_numbers = #tpu.dot_dimension_numbers<[2], [2], [1], [1], [0, 0, 0, 1, 1, 1], [0], [0]>} : vector<2x8x8xf32>, vector<2x8x8xf32>, vector<2x8x8xf32> -> vector<2x8x8xf32>
    "tpu.trace_stop"() : () -> ()
    %cst_32 = arith.constant 0.353553385 : f32
    %85 = vector.broadcast %cst_32 : f32 to vector<2x8x8xf32>
    %86 = arith.mulf %84, %85 : vector<2x8x8xf32>
    %cst_33 = arith.constant dense<0xFF800000> : vector<2x8xf32>
    %87 = vector.multi_reduction <maximumf>, %86, %cst_33 [2] : vector<2x8x8xf32> to vector<2x8xf32>
    %88 = vector.shape_cast %87 : vector<2x8xf32> to vector<2x8x1xf32>
    %89 = vector.broadcast %88 : vector<2x8x1xf32> to vector<2x8x8xf32>
    %90 = arith.subf %86, %89 : vector<2x8x8xf32>
    %91 = math.exp %90 : vector<2x8x8xf32>
    %cst_34 = arith.constant dense<0.000000e+00> : vector<2x8xf32>
    %92 = vector.multi_reduction <add>, %91, %cst_34 [2] : vector<2x8x8xf32> to vector<2x8xf32>
    %93 = vector.shape_cast %92 : vector<2x8xf32> to vector<2x8x1xf32>
    %94 = vector.broadcast %93 : vector<2x8x1xf32> to vector<2x8x8xf32>
    %95 = arith.divf %91, %94 : vector<2x8x8xf32>
    "tpu.trace_start"() <{level = 10 : i32, message = "bst,btd->bsd"}> : () -> ()
    %cst_35 = arith.constant dense<0.000000e+00> : vector<2x8x8xf32>
    %96 = tpu.matmul %95, %83, %cst_35 {dimension_numbers = #tpu.dot_dimension_numbers<[2], [1], [1], [2], [0, 0, 0, 1, 1, 2], [0], [0]>} : vector<2x8x8xf32>, vector<2x8x8xf32>, vector<2x8x8xf32> -> vector<2x8x8xf32>
    "tpu.trace_stop"() : () -> ()
    %97 = vector.extract_strided_slice %48 {offsets = [0, 0, 24], sizes = [2, 8, 8], strides = [1, 1, 1]} : vector<2x8x96xf32> to vector<2x8x8xf32>
    %98 = vector.extract_strided_slice %48 {offsets = [0, 0, 56], sizes = [2, 8, 8], strides = [1, 1, 1]} : vector<2x8x96xf32> to vector<2x8x8xf32>
    %99 = vector.extract_strided_slice %48 {offsets = [0, 0, 88], sizes = [2, 8, 8], strides = [1, 1, 1]} : vector<2x8x96xf32> to vector<2x8x8xf32>
    "tpu.trace_start"() <{level = 10 : i32, message = "bsd,btd->bst"}> : () -> ()
    %cst_36 = arith.constant dense<0.000000e+00> : vector<2x8x8xf32>
    %100 = tpu.matmul %97, %98, %cst_36 {dimension_numbers = #tpu.dot_dimension_numbers<[2], [2], [1], [1], [0, 0, 0, 1, 1, 1], [0], [0]>} : vector<2x8x8xf32>, vector<2x8x8xf32>, vector<2x8x8xf32> -> vector<2x8x8xf32>
    "tpu.trace_stop"() : () -> ()
    %cst_37 = arith.constant 0.353553385 : f32
    %101 = vector.broadcast %cst_37 : f32 to vector<2x8x8xf32>
    %102 = arith.mulf %100, %101 : vector<2x8x8xf32>
    %cst_38 = arith.constant dense<0xFF800000> : vector<2x8xf32>
    %103 = vector.multi_reduction <maximumf>, %102, %cst_38 [2] : vector<2x8x8xf32> to vector<2x8xf32>
    %104 = vector.shape_cast %103 : vector<2x8xf32> to vector<2x8x1xf32>
    %105 = vector.broadcast %104 : vector<2x8x1xf32> to vector<2x8x8xf32>
    %106 = arith.subf %102, %105 : vector<2x8x8xf32>
    %107 = math.exp %106 : vector<2x8x8xf32>
    %cst_39 = arith.constant dense<0.000000e+00> : vector<2x8xf32>
    %108 = vector.multi_reduction <add>, %107, %cst_39 [2] : vector<2x8x8xf32> to vector<2x8xf32>
    %109 = vector.shape_cast %108 : vector<2x8xf32> to vector<2x8x1xf32>
    %110 = vector.broadcast %109 : vector<2x8x1xf32> to vector<2x8x8xf32>
    %111 = arith.divf %107, %110 : vector<2x8x8xf32>
    "tpu.trace_start"() <{level = 10 : i32, message = "bst,btd->bsd"}> : () -> ()
    %cst_40 = arith.constant dense<0.000000e+00> : vector<2x8x8xf32>
    %112 = tpu.matmul %111, %99, %cst_40 {dimension_numbers = #tpu.dot_dimension_numbers<[2], [1], [1], [2], [0, 0, 0, 1, 1, 2], [0], [0]>} : vector<2x8x8xf32>, vector<2x8x8xf32>, vector<2x8x8xf32> -> vector<2x8x8xf32>
    "tpu.trace_stop"() : () -> ()
    %113 = tpu.concatenate %64, %80, %96, %112 in 2 : vector<2x8x8xf32>, vector<2x8x8xf32>, vector<2x8x8xf32>, vector<2x8x8xf32> -> vector<2x8x32xf32>
    %114 = vector.shape_cast %113 : vector<2x8x32xf32> to vector<16x32xf32>
    %cst_41 = arith.constant dense<0.000000e+00> : vector<16x32xf32>
    %115 = tpu.matmul %114, %16, %cst_41 {dimension_numbers = #tpu.dot_dimension_numbers<[1], [0], [0], [1], [0, 0, 1, 1], [], []>} : vector<16x32xf32>, vector<32x32xf32>, vector<16x32xf32> -> vector<16x32xf32>
    %116 = vector.broadcast %7 : vector<1x32xf32> to vector<16x32xf32>
    %117 = arith.addf %115, %116 : vector<16x32xf32>
    %118 = arith.addf %114, %117 : vector<16x32xf32>
    %cst_42 = arith.constant dense<0.000000e+00> : vector<16xf32>
    %119 = vector.multi_reduction <add>, %118, %cst_42 [1] : vector<16x32xf32> to vector<16xf32>
    %120 = vector.shape_cast %119 : vector<16xf32> to vector<16x1xf32>
    %cst_43 = arith.constant 3.200000e+01 : f32
    %121 = vector.broadcast %cst_43 : f32 to vector<16x1xf32>
    %122 = arith.divf %120, %121 : vector<16x1xf32>
    %123 = vector.broadcast %122 : vector<16x1xf32> to vector<16x32xf32>
    %124 = arith.subf %118, %123 : vector<16x32xf32>
    %125 = arith.mulf %124, %124 : vector<16x32xf32>
    %cst_44 = arith.constant dense<0.000000e+00> : vector<16xf32>
    %126 = vector.multi_reduction <add>, %125, %cst_44 [1] : vector<16x32xf32> to vector<16xf32>
    %127 = vector.shape_cast %126 : vector<16xf32> to vector<16x1xf32>
    %cst_45 = arith.constant 3.200000e+01 : f32
    %128 = vector.broadcast %cst_45 : f32 to vector<16x1xf32>
    %129 = arith.divf %127, %128 : vector<16x1xf32>
    %130 = vector.broadcast %122 : vector<16x1xf32> to vector<16x32xf32>
    %131 = arith.subf %118, %130 : vector<16x32xf32>
    %cst_46 = arith.constant 9.99999996E-13 : f32
    %132 = vector.broadcast %cst_46 : f32 to vector<16x1xf32>
    %133 = arith.addf %129, %132 : vector<16x1xf32>
    %134 = math.sqrt %133 : vector<16x1xf32>
    %135 = vector.broadcast %134 : vector<16x1xf32> to vector<16x32xf32>
    %136 = arith.divf %131, %135 : vector<16x32xf32>
    %137 = vector.broadcast %8 : vector<1x32xf32> to vector<16x32xf32>
    %138 = arith.mulf %137, %136 : vector<16x32xf32>
    %139 = vector.broadcast %9 : vector<1x32xf32> to vector<16x32xf32>
    %140 = arith.addf %138, %139 : vector<16x32xf32>
    %cst_47 = arith.constant dense<0.000000e+00> : vector<16x64xf32>
    %141 = tpu.matmul %140, %17, %cst_47 {dimension_numbers = #tpu.dot_dimension_numbers<[1], [0], [0], [1], [0, 0, 1, 1], [], []>} : vector<16x32xf32>, vector<32x64xf32>, vector<16x64xf32> -> vector<16x64xf32>
    %142 = vector.broadcast %10 : vector<1x64xf32> to vector<16x64xf32>
    %143 = arith.addf %141, %142 : vector<16x64xf32>
    %cst_48 = arith.constant 5.000000e-01 : f32
    %144 = vector.broadcast %cst_48 : f32 to vector<16x64xf32>
    %145 = arith.mulf %143, %144 : vector<16x64xf32>
    %cst_49 = arith.constant 0.707106769 : f32
    %146 = vector.broadcast %cst_49 : f32 to vector<16x64xf32>
    %147 = arith.mulf %143, %146 : vector<16x64xf32>
    %cst_50 = arith.constant 0.000000e+00 : f32
    %148 = vector.broadcast %cst_50 : f32 to vector<16x64xf32>
    %149 = arith.cmpf oge, %147, %148 : vector<16x64xf32>
    %cst_51 = arith.constant 1.000000e+00 : f32
    %cst_52 = arith.constant -1.000000e+00 : f32
    %150 = vector.broadcast %cst_51 : f32 to vector<16x64xf32>
    %151 = vector.broadcast %cst_52 : f32 to vector<16x64xf32>
    %152 = arith.select %149, %150, %151 : vector<16x64xi1>, vector<16x64xf32>
    %153 = math.absf %147 : vector<16x64xf32>
    %cst_53 = arith.constant 0.327591091 : f32
    %154 = vector.broadcast %cst_53 : f32 to vector<16x64xf32>
    %155 = arith.mulf %154, %153 : vector<16x64xf32>
    %cst_54 = arith.constant 1.000000e+00 : f32
    %156 = vector.broadcast %cst_54 : f32 to vector<16x64xf32>
    %157 = arith.addf %156, %155 : vector<16x64xf32>
    %cst_55 = arith.constant 1.000000e+00 : f32
    %158 = vector.broadcast %cst_55 : f32 to vector<16x64xf32>
    %159 = arith.divf %158, %157 : vector<16x64xf32>
    %cst_56 = arith.constant 1.06140542 : f32
    %160 = vector.broadcast %cst_56 : f32 to vector<16x64xf32>
    %161 = arith.mulf %160, %159 : vector<16x64xf32>
    %cst_57 = arith.constant -1.45315206 : f32
    %162 = vector.broadcast %cst_57 : f32 to vector<16x64xf32>
    %163 = arith.addf %161, %162 : vector<16x64xf32>
    %164 = arith.mulf %163, %159 : vector<16x64xf32>
    %cst_58 = arith.constant 1.42141378 : f32
    %165 = vector.broadcast %cst_58 : f32 to vector<16x64xf32>
    %166 = arith.addf %164, %165 : vector<16x64xf32>
    %167 = arith.mulf %166, %159 : vector<16x64xf32>
    %cst_59 = arith.constant -0.284496725 : f32
    %168 = vector.broadcast %cst_59 : f32 to vector<16x64xf32>
    %169 = arith.addf %167, %168 : vector<16x64xf32>
    %170 = arith.mulf %169, %159 : vector<16x64xf32>
    %cst_60 = arith.constant 0.254829586 : f32
    %171 = vector.broadcast %cst_60 : f32 to vector<16x64xf32>
    %172 = arith.addf %170, %171 : vector<16x64xf32>
    %173 = arith.mulf %172, %159 : vector<16x64xf32>
    %cst_61 = arith.constant 0.000000e+00 : f32
    %174 = vector.broadcast %cst_61 : f32 to vector<16x64xf32>
    %175 = arith.subf %174, %153 : vector<16x64xf32>
    %176 = arith.mulf %175, %153 : vector<16x64xf32>
    %177 = math.exp %176 : vector<16x64xf32>
    %178 = arith.mulf %173, %177 : vector<16x64xf32>
    %cst_62 = arith.constant 1.000000e+00 : f32
    %179 = vector.broadcast %cst_62 : f32 to vector<16x64xf32>
    %180 = arith.subf %179, %178 : vector<16x64xf32>
    %181 = arith.mulf %152, %180 : vector<16x64xf32>
    %cst_63 = arith.constant 1.000000e+00 : f32
    %182 = vector.broadcast %cst_63 : f32 to vector<16x64xf32>
    %183 = arith.addf %182, %181 : vector<16x64xf32>
    %184 = arith.mulf %145, %183 : vector<16x64xf32>
    %cst_64 = arith.constant dense<0.000000e+00> : vector<16x32xf32>
    %185 = tpu.matmul %184, %18, %cst_64 {dimension_numbers = #tpu.dot_dimension_numbers<[1], [0], [0], [1], [0, 0, 1, 1], [], []>} : vector<16x64xf32>, vector<64x32xf32>, vector<16x32xf32> -> vector<16x32xf32>
    %186 = vector.broadcast %11 : vector<1x32xf32> to vector<16x32xf32>
    %187 = arith.addf %185, %186 : vector<16x32xf32>
    %188 = arith.addf %140, %187 : vector<16x32xf32>
    %cst_65 = arith.constant dense<0.000000e+00> : vector<16xf32>
    %189 = vector.multi_reduction <add>, %188, %cst_65 [1] : vector<16x32xf32> to vector<16xf32>
    %190 = vector.shape_cast %189 : vector<16xf32> to vector<16x1xf32>
    %cst_66 = arith.constant 3.200000e+01 : f32
    %191 = vector.broadcast %cst_66 : f32 to vector<16x1xf32>
    %192 = arith.divf %190, %191 : vector<16x1xf32>
    %193 = vector.broadcast %192 : vector<16x1xf32> to vector<16x32xf32>
    %194 = arith.subf %188, %193 : vector<16x32xf32>
    %195 = arith.mulf %194, %194 : vector<16x32xf32>
    %cst_67 = arith.constant dense<0.000000e+00> : vector<16xf32>
    %196 = vector.multi_reduction <add>, %195, %cst_67 [1] : vector<16x32xf32> to vector<16xf32>
    %197 = vector.shape_cast %196 : vector<16xf32> to vector<16x1xf32>
    %cst_68 = arith.constant 3.200000e+01 : f32
    %198 = vector.broadcast %cst_68 : f32 to vector<16x1xf32>
    %199 = arith.divf %197, %198 : vector<16x1xf32>
    %200 = vector.broadcast %192 : vector<16x1xf32> to vector<16x32xf32>
    %201 = arith.subf %188, %200 : vector<16x32xf32>
    %cst_69 = arith.constant 9.99999996E-13 : f32
    %202 = vector.broadcast %cst_69 : f32 to vector<16x1xf32>
    %203 = arith.addf %199, %202 : vector<16x1xf32>
    %204 = math.sqrt %203 : vector<16x1xf32>
    %205 = vector.broadcast %204 : vector<16x1xf32> to vector<16x32xf32>
    %206 = arith.divf %201, %205 : vector<16x32xf32>
    %207 = vector.broadcast %12 : vector<1x32xf32> to vector<16x32xf32>
    %208 = arith.mulf %207, %206 : vector<16x32xf32>
    %209 = vector.broadcast %13 : vector<1x32xf32> to vector<16x32xf32>
    %210 = arith.addf %208, %209 : vector<16x32xf32>
    %cst_70 = arith.constant dense<0.000000e+00> : vector<16x96xf32>
    %211 = tpu.matmul %210, %15, %cst_70 {dimension_numbers = #tpu.dot_dimension_numbers<[1], [0], [0], [1], [0, 0, 1, 1], [], []>} : vector<16x32xf32>, vector<32x96xf32>, vector<16x96xf32> -> vector<16x96xf32>
    %212 = vector.broadcast %6 : vector<1x96xf32> to vector<16x96xf32>
    %213 = arith.addf %211, %212 : vector<16x96xf32>
    %214 = vector.shape_cast %213 : vector<16x96xf32> to vector<2x8x96xf32>
    %215 = vector.extract_strided_slice %214 {offsets = [0, 0, 0], sizes = [2, 8, 8], strides = [1, 1, 1]} : vector<2x8x96xf32> to vector<2x8x8xf32>
    %216 = vector.extract_strided_slice %214 {offsets = [0, 0, 32], sizes = [2, 8, 8], strides = [1, 1, 1]} : vector<2x8x96xf32> to vector<2x8x8xf32>
    %217 = vector.extract_strided_slice %214 {offsets = [0, 0, 64], sizes = [2, 8, 8], strides = [1, 1, 1]} : vector<2x8x96xf32> to vector<2x8x8xf32>
    "tpu.trace_start"() <{level = 10 : i32, message = "bsd,btd->bst"}> : () -> ()
    %cst_71 = arith.constant dense<0.000000e+00> : vector<2x8x8xf32>
    %218 = tpu.matmul %215, %216, %cst_71 {dimension_numbers = #tpu.dot_dimension_numbers<[2], [2], [1], [1], [0, 0, 0, 1, 1, 1], [0], [0]>} : vector<2x8x8xf32>, vector<2x8x8xf32>, vector<2x8x8xf32> -> vector<2x8x8xf32>
    "tpu.trace_stop"() : () -> ()
    %cst_72 = arith.constant 0.353553385 : f32
    %219 = vector.broadcast %cst_72 : f32 to vector<2x8x8xf32>
    %220 = arith.mulf %218, %219 : vector<2x8x8xf32>
    %cst_73 = arith.constant dense<0xFF800000> : vector<2x8xf32>
    %221 = vector.multi_reduction <maximumf>, %220, %cst_73 [2] : vector<2x8x8xf32> to vector<2x8xf32>
    %222 = vector.shape_cast %221 : vector<2x8xf32> to vector<2x8x1xf32>
    %223 = vector.broadcast %222 : vector<2x8x1xf32> to vector<2x8x8xf32>
    %224 = arith.subf %220, %223 : vector<2x8x8xf32>
    %225 = math.exp %224 : vector<2x8x8xf32>
    %cst_74 = arith.constant dense<0.000000e+00> : vector<2x8xf32>
    %226 = vector.multi_reduction <add>, %225, %cst_74 [2] : vector<2x8x8xf32> to vector<2x8xf32>
    %227 = vector.shape_cast %226 : vector<2x8xf32> to vector<2x8x1xf32>
    %228 = vector.broadcast %227 : vector<2x8x1xf32> to vector<2x8x8xf32>
    %229 = arith.divf %225, %228 : vector<2x8x8xf32>
    "tpu.trace_start"() <{level = 10 : i32, message = "bst,btd->bsd"}> : () -> ()
    %cst_75 = arith.constant dense<0.000000e+00> : vector<2x8x8xf32>
    %230 = tpu.matmul %229, %217, %cst_75 {dimension_numbers = #tpu.dot_dimension_numbers<[2], [1], [1], [2], [0, 0, 0, 1, 1, 2], [0], [0]>} : vector<2x8x8xf32>, vector<2x8x8xf32>, vector<2x8x8xf32> -> vector<2x8x8xf32>
    "tpu.trace_stop"() : () -> ()
    %231 = vector.extract_strided_slice %214 {offsets = [0, 0, 8], sizes = [2, 8, 8], strides = [1, 1, 1]} : vector<2x8x96xf32> to vector<2x8x8xf32>
    %232 = vector.extract_strided_slice %214 {offsets = [0, 0, 40], sizes = [2, 8, 8], strides = [1, 1, 1]} : vector<2x8x96xf32> to vector<2x8x8xf32>
    %233 = vector.extract_strided_slice %214 {offsets = [0, 0, 72], sizes = [2, 8, 8], strides = [1, 1, 1]} : vector<2x8x96xf32> to vector<2x8x8xf32>
    "tpu.trace_start"() <{level = 10 : i32, message = "bsd,btd->bst"}> : () -> ()
    %cst_76 = arith.constant dense<0.000000e+00> : vector<2x8x8xf32>
    %234 = tpu.matmul %231, %232, %cst_76 {dimension_numbers = #tpu.dot_dimension_numbers<[2], [2], [1], [1], [0, 0, 0, 1, 1, 1], [0], [0]>} : vector<2x8x8xf32>, vector<2x8x8xf32>, vector<2x8x8xf32> -> vector<2x8x8xf32>
    "tpu.trace_stop"() : () -> ()
    %cst_77 = arith.constant 0.353553385 : f32
    %235 = vector.broadcast %cst_77 : f32 to vector<2x8x8xf32>
    %236 = arith.mulf %234, %235 : vector<2x8x8xf32>
    %cst_78 = arith.constant dense<0xFF800000> : vector<2x8xf32>
    %237 = vector.multi_reduction <maximumf>, %236, %cst_78 [2] : vector<2x8x8xf32> to vector<2x8xf32>
    %238 = vector.shape_cast %237 : vector<2x8xf32> to vector<2x8x1xf32>
    %239 = vector.broadcast %238 : vector<2x8x1xf32> to vector<2x8x8xf32>
    %240 = arith.subf %236, %239 : vector<2x8x8xf32>
    %241 = math.exp %240 : vector<2x8x8xf32>
    %cst_79 = arith.constant dense<0.000000e+00> : vector<2x8xf32>
    %242 = vector.multi_reduction <add>, %241, %cst_79 [2] : vector<2x8x8xf32> to vector<2x8xf32>
    %243 = vector.shape_cast %242 : vector<2x8xf32> to vector<2x8x1xf32>
    %244 = vector.broadcast %243 : vector<2x8x1xf32> to vector<2x8x8xf32>
    %245 = arith.divf %241, %244 : vector<2x8x8xf32>
    "tpu.trace_start"() <{level = 10 : i32, message = "bst,btd->bsd"}> : () -> ()
    %cst_80 = arith.constant dense<0.000000e+00> : vector<2x8x8xf32>
    %246 = tpu.matmul %245, %233, %cst_80 {dimension_numbers = #tpu.dot_dimension_numbers<[2], [1], [1], [2], [0, 0, 0, 1, 1, 2], [0], [0]>} : vector<2x8x8xf32>, vector<2x8x8xf32>, vector<2x8x8xf32> -> vector<2x8x8xf32>
    "tpu.trace_stop"() : () -> ()
    %247 = vector.extract_strided_slice %214 {offsets = [0, 0, 16], sizes = [2, 8, 8], strides = [1, 1, 1]} : vector<2x8x96xf32> to vector<2x8x8xf32>
    %248 = vector.extract_strided_slice %214 {offsets = [0, 0, 48], sizes = [2, 8, 8], strides = [1, 1, 1]} : vector<2x8x96xf32> to vector<2x8x8xf32>
    %249 = vector.extract_strided_slice %214 {offsets = [0, 0, 80], sizes = [2, 8, 8], strides = [1, 1, 1]} : vector<2x8x96xf32> to vector<2x8x8xf32>
    "tpu.trace_start"() <{level = 10 : i32, message = "bsd,btd->bst"}> : () -> ()
    %cst_81 = arith.constant dense<0.000000e+00> : vector<2x8x8xf32>
    %250 = tpu.matmul %247, %248, %cst_81 {dimension_numbers = #tpu.dot_dimension_numbers<[2], [2], [1], [1], [0, 0, 0, 1, 1, 1], [0], [0]>} : vector<2x8x8xf32>, vector<2x8x8xf32>, vector<2x8x8xf32> -> vector<2x8x8xf32>
    "tpu.trace_stop"() : () -> ()
    %cst_82 = arith.constant 0.353553385 : f32
    %251 = vector.broadcast %cst_82 : f32 to vector<2x8x8xf32>
    %252 = arith.mulf %250, %251 : vector<2x8x8xf32>
    %cst_83 = arith.constant dense<0xFF800000> : vector<2x8xf32>
    %253 = vector.multi_reduction <maximumf>, %252, %cst_83 [2] : vector<2x8x8xf32> to vector<2x8xf32>
    %254 = vector.shape_cast %253 : vector<2x8xf32> to vector<2x8x1xf32>
    %255 = vector.broadcast %254 : vector<2x8x1xf32> to vector<2x8x8xf32>
    %256 = arith.subf %252, %255 : vector<2x8x8xf32>
    %257 = math.exp %256 : vector<2x8x8xf32>
    %cst_84 = arith.constant dense<0.000000e+00> : vector<2x8xf32>
    %258 = vector.multi_reduction <add>, %257, %cst_84 [2] : vector<2x8x8xf32> to vector<2x8xf32>
    %259 = vector.shape_cast %258 : vector<2x8xf32> to vector<2x8x1xf32>
    %260 = vector.broadcast %259 : vector<2x8x1xf32> to vector<2x8x8xf32>
    %261 = arith.divf %257, %260 : vector<2x8x8xf32>
    "tpu.trace_start"() <{level = 10 : i32, message = "bst,btd->bsd"}> : () -> ()
    %cst_85 = arith.constant dense<0.000000e+00> : vector<2x8x8xf32>
    %262 = tpu.matmul %261, %249, %cst_85 {dimension_numbers = #tpu.dot_dimension_numbers<[2], [1], [1], [2], [0, 0, 0, 1, 1, 2], [0], [0]>} : vector<2x8x8xf32>, vector<2x8x8xf32>, vector<2x8x8xf32> -> vector<2x8x8xf32>
    "tpu.trace_stop"() : () -> ()
    %263 = vector.extract_strided_slice %214 {offsets = [0, 0, 24], sizes = [2, 8, 8], strides = [1, 1, 1]} : vector<2x8x96xf32> to vector<2x8x8xf32>
    %264 = vector.extract_strided_slice %214 {offsets = [0, 0, 56], sizes = [2, 8, 8], strides = [1, 1, 1]} : vector<2x8x96xf32> to vector<2x8x8xf32>
    %265 = vector.extract_strided_slice %214 {offsets = [0, 0, 88], sizes = [2, 8, 8], strides = [1, 1, 1]} : vector<2x8x96xf32> to vector<2x8x8xf32>
    "tpu.trace_start"() <{level = 10 : i32, message = "bsd,btd->bst"}> : () -> ()
    %cst_86 = arith.constant dense<0.000000e+00> : vector<2x8x8xf32>
    %266 = tpu.matmul %263, %264, %cst_86 {dimension_numbers = #tpu.dot_dimension_numbers<[2], [2], [1], [1], [0, 0, 0, 1, 1, 1], [0], [0]>} : vector<2x8x8xf32>, vector<2x8x8xf32>, vector<2x8x8xf32> -> vector<2x8x8xf32>
    "tpu.trace_stop"() : () -> ()
    %cst_87 = arith.constant 0.353553385 : f32
    %267 = vector.broadcast %cst_87 : f32 to vector<2x8x8xf32>
    %268 = arith.mulf %266, %267 : vector<2x8x8xf32>
    %cst_88 = arith.constant dense<0xFF800000> : vector<2x8xf32>
    %269 = vector.multi_reduction <maximumf>, %268, %cst_88 [2] : vector<2x8x8xf32> to vector<2x8xf32>
    %270 = vector.shape_cast %269 : vector<2x8xf32> to vector<2x8x1xf32>
    %271 = vector.broadcast %270 : vector<2x8x1xf32> to vector<2x8x8xf32>
    %272 = arith.subf %268, %271 : vector<2x8x8xf32>
    %273 = math.exp %272 : vector<2x8x8xf32>
    %cst_89 = arith.constant dense<0.000000e+00> : vector<2x8xf32>
    %274 = vector.multi_reduction <add>, %273, %cst_89 [2] : vector<2x8x8xf32> to vector<2x8xf32>
    %275 = vector.shape_cast %274 : vector<2x8xf32> to vector<2x8x1xf32>
    %276 = vector.broadcast %275 : vector<2x8x1xf32> to vector<2x8x8xf32>
    %277 = arith.divf %273, %276 : vector<2x8x8xf32>
    "tpu.trace_start"() <{level = 10 : i32, message = "bst,btd->bsd"}> : () -> ()
    %cst_90 = arith.constant dense<0.000000e+00> : vector<2x8x8xf32>
    %278 = tpu.matmul %277, %265, %cst_90 {dimension_numbers = #tpu.dot_dimension_numbers<[2], [1], [1], [2], [0, 0, 0, 1, 1, 2], [0], [0]>} : vector<2x8x8xf32>, vector<2x8x8xf32>, vector<2x8x8xf32> -> vector<2x8x8xf32>
    "tpu.trace_stop"() : () -> ()
    %279 = tpu.concatenate %230, %246, %262, %278 in 2 : vector<2x8x8xf32>, vector<2x8x8xf32>, vector<2x8x8xf32>, vector<2x8x8xf32> -> vector<2x8x32xf32>
    %280 = vector.shape_cast %279 : vector<2x8x32xf32> to vector<16x32xf32>
    %cst_91 = arith.constant dense<0.000000e+00> : vector<16x32xf32>
    %281 = tpu.matmul %280, %16, %cst_91 {dimension_numbers = #tpu.dot_dimension_numbers<[1], [0], [0], [1], [0, 0, 1, 1], [], []>} : vector<16x32xf32>, vector<32x32xf32>, vector<16x32xf32> -> vector<16x32xf32>
    %282 = vector.broadcast %7 : vector<1x32xf32> to vector<16x32xf32>
    %283 = arith.addf %281, %282 : vector<16x32xf32>
    %284 = arith.addf %280, %283 : vector<16x32xf32>
    %cst_92 = arith.constant dense<0.000000e+00> : vector<16xf32>
    %285 = vector.multi_reduction <add>, %284, %cst_92 [1] : vector<16x32xf32> to vector<16xf32>
    %286 = vector.shape_cast %285 : vector<16xf32> to vector<16x1xf32>
    %cst_93 = arith.constant 3.200000e+01 : f32
    %287 = vector.broadcast %cst_93 : f32 to vector<16x1xf32>
    %288 = arith.divf %286, %287 : vector<16x1xf32>
    %289 = vector.broadcast %288 : vector<16x1xf32> to vector<16x32xf32>
    %290 = arith.subf %284, %289 : vector<16x32xf32>
    %291 = arith.mulf %290, %290 : vector<16x32xf32>
    %cst_94 = arith.constant dense<0.000000e+00> : vector<16xf32>
    %292 = vector.multi_reduction <add>, %291, %cst_94 [1] : vector<16x32xf32> to vector<16xf32>
    %293 = vector.shape_cast %292 : vector<16xf32> to vector<16x1xf32>
    %cst_95 = arith.constant 3.200000e+01 : f32
    %294 = vector.broadcast %cst_95 : f32 to vector<16x1xf32>
    %295 = arith.divf %293, %294 : vector<16x1xf32>
    %296 = vector.broadcast %288 : vector<16x1xf32> to vector<16x32xf32>
    %297 = arith.subf %284, %296 : vector<16x32xf32>
    %cst_96 = arith.constant 9.99999996E-13 : f32
    %298 = vector.broadcast %cst_96 : f32 to vector<16x1xf32>
    %299 = arith.addf %295, %298 : vector<16x1xf32>
    %300 = math.sqrt %299 : vector<16x1xf32>
    %301 = vector.broadcast %300 : vector<16x1xf32> to vector<16x32xf32>
    %302 = arith.divf %297, %301 : vector<16x32xf32>
    %303 = vector.broadcast %8 : vector<1x32xf32> to vector<16x32xf32>
    %304 = arith.mulf %303, %302 : vector<16x32xf32>
    %305 = vector.broadcast %9 : vector<1x32xf32> to vector<16x32xf32>
    %306 = arith.addf %304, %305 : vector<16x32xf32>
    %cst_97 = arith.constant dense<0.000000e+00> : vector<16x64xf32>
    %307 = tpu.matmul %306, %17, %cst_97 {dimension_numbers = #tpu.dot_dimension_numbers<[1], [0], [0], [1], [0, 0, 1, 1], [], []>} : vector<16x32xf32>, vector<32x64xf32>, vector<16x64xf32> -> vector<16x64xf32>
    %308 = vector.broadcast %10 : vector<1x64xf32> to vector<16x64xf32>
    %309 = arith.addf %307, %308 : vector<16x64xf32>
    %cst_98 = arith.constant 5.000000e-01 : f32
    %310 = vector.broadcast %cst_98 : f32 to vector<16x64xf32>
    %311 = arith.mulf %309, %310 : vector<16x64xf32>
    %cst_99 = arith.constant 0.707106769 : f32
    %312 = vector.broadcast %cst_99 : f32 to vector<16x64xf32>
    %313 = arith.mulf %309, %312 : vector<16x64xf32>
    %cst_100 = arith.constant 0.000000e+00 : f32
    %314 = vector.broadcast %cst_100 : f32 to vector<16x64xf32>
    %315 = arith.cmpf oge, %313, %314 : vector<16x64xf32>
    %cst_101 = arith.constant 1.000000e+00 : f32
    %cst_102 = arith.constant -1.000000e+00 : f32
    %316 = vector.broadcast %cst_101 : f32 to vector<16x64xf32>
    %317 = vector.broadcast %cst_102 : f32 to vector<16x64xf32>
    %318 = arith.select %315, %316, %317 : vector<16x64xi1>, vector<16x64xf32>
    %319 = math.absf %313 : vector<16x64xf32>
    %cst_103 = arith.constant 0.327591091 : f32
    %320 = vector.broadcast %cst_103 : f32 to vector<16x64xf32>
    %321 = arith.mulf %320, %319 : vector<16x64xf32>
    %cst_104 = arith.constant 1.000000e+00 : f32
    %322 = vector.broadcast %cst_104 : f32 to vector<16x64xf32>
    %323 = arith.addf %322, %321 : vector<16x64xf32>
    %cst_105 = arith.constant 1.000000e+00 : f32
    %324 = vector.broadcast %cst_105 : f32 to vector<16x64xf32>
    %325 = arith.divf %324, %323 : vector<16x64xf32>
    %cst_106 = arith.constant 1.06140542 : f32
    %326 = vector.broadcast %cst_106 : f32 to vector<16x64xf32>
    %327 = arith.mulf %326, %325 : vector<16x64xf32>
    %cst_107 = arith.constant -1.45315206 : f32
    %328 = vector.broadcast %cst_107 : f32 to vector<16x64xf32>
    %329 = arith.addf %327, %328 : vector<16x64xf32>
    %330 = arith.mulf %329, %325 : vector<16x64xf32>
    %cst_108 = arith.constant 1.42141378 : f32
    %331 = vector.broadcast %cst_108 : f32 to vector<16x64xf32>
    %332 = arith.addf %330, %331 : vector<16x64xf32>
    %333 = arith.mulf %332, %325 : vector<16x64xf32>
    %cst_109 = arith.constant -0.284496725 : f32
    %334 = vector.broadcast %cst_109 : f32 to vector<16x64xf32>
    %335 = arith.addf %333, %334 : vector<16x64xf32>
    %336 = arith.mulf %335, %325 : vector<16x64xf32>
    %cst_110 = arith.constant 0.254829586 : f32
    %337 = vector.broadcast %cst_110 : f32 to vector<16x64xf32>
    %338 = arith.addf %336, %337 : vector<16x64xf32>
    %339 = arith.mulf %338, %325 : vector<16x64xf32>
    %cst_111 = arith.constant 0.000000e+00 : f32
    %340 = vector.broadcast %cst_111 : f32 to vector<16x64xf32>
    %341 = arith.subf %340, %319 : vector<16x64xf32>
    %342 = arith.mulf %341, %319 : vector<16x64xf32>
    %343 = math.exp %342 : vector<16x64xf32>
    %344 = arith.mulf %339, %343 : vector<16x64xf32>
    %cst_112 = arith.constant 1.000000e+00 : f32
    %345 = vector.broadcast %cst_112 : f32 to vector<16x64xf32>
    %346 = arith.subf %345, %344 : vector<16x64xf32>
    %347 = arith.mulf %318, %346 : vector<16x64xf32>
    %cst_113 = arith.constant 1.000000e+00 : f32
    %348 = vector.broadcast %cst_113 : f32 to vector<16x64xf32>
    %349 = arith.addf %348, %347 : vector<16x64xf32>
    %350 = arith.mulf %311, %349 : vector<16x64xf32>
    %cst_114 = arith.constant dense<0.000000e+00> : vector<16x32xf32>
    %351 = tpu.matmul %350, %18, %cst_114 {dimension_numbers = #tpu.dot_dimension_numbers<[1], [0], [0], [1], [0, 0, 1, 1], [], []>} : vector<16x64xf32>, vector<64x32xf32>, vector<16x32xf32> -> vector<16x32xf32>
    %352 = vector.broadcast %11 : vector<1x32xf32> to vector<16x32xf32>
    %353 = arith.addf %351, %352 : vector<16x32xf32>
    %354 = arith.addf %306, %353 : vector<16x32xf32>
    %cst_115 = arith.constant dense<0.000000e+00> : vector<16xf32>
    %355 = vector.multi_reduction <add>, %354, %cst_115 [1] : vector<16x32xf32> to vector<16xf32>
    %356 = vector.shape_cast %355 : vector<16xf32> to vector<16x1xf32>
    %cst_116 = arith.constant 3.200000e+01 : f32
    %357 = vector.broadcast %cst_116 : f32 to vector<16x1xf32>
    %358 = arith.divf %356, %357 : vector<16x1xf32>
    %359 = vector.broadcast %358 : vector<16x1xf32> to vector<16x32xf32>
    %360 = arith.subf %354, %359 : vector<16x32xf32>
    %361 = arith.mulf %360, %360 : vector<16x32xf32>
    %cst_117 = arith.constant dense<0.000000e+00> : vector<16xf32>
    %362 = vector.multi_reduction <add>, %361, %cst_117 [1] : vector<16x32xf32> to vector<16xf32>
    %363 = vector.shape_cast %362 : vector<16xf32> to vector<16x1xf32>
    %cst_118 = arith.constant 3.200000e+01 : f32
    %364 = vector.broadcast %cst_118 : f32 to vector<16x1xf32>
    %365 = arith.divf %363, %364 : vector<16x1xf32>
    %366 = vector.broadcast %358 : vector<16x1xf32> to vector<16x32xf32>
    %367 = arith.subf %354, %366 : vector<16x32xf32>
    %cst_119 = arith.constant 9.99999996E-13 : f32
    %368 = vector.broadcast %cst_119 : f32 to vector<16x1xf32>
    %369 = arith.addf %365, %368 : vector<16x1xf32>
    %370 = math.sqrt %369 : vector<16x1xf32>
    %371 = vector.broadcast %370 : vector<16x1xf32> to vector<16x32xf32>
    %372 = arith.divf %367, %371 : vector<16x32xf32>
    %373 = vector.broadcast %12 : vector<1x32xf32> to vector<16x32xf32>
    %374 = arith.mulf %373, %372 : vector<16x32xf32>
    %375 = vector.broadcast %13 : vector<1x32xf32> to vector<16x32xf32>
    %376 = arith.addf %374, %375 : vector<16x32xf32>
    %cst_120 = arith.constant 0.000000e+00 : f32
    %377 = vector.broadcast %cst_120 : f32 to vector<16x96xf32>
    %378 = tpu.concatenate %376, %377 in 1 : vector<16x32xf32>, vector<16x96xf32> -> vector<16x128xf32>
    %c0_121 = arith.constant 0 : index
    %c0_122 = arith.constant 0 : index
    %379 = vector.load %arg9[%c0_121, %c0_122] : memref<16x128xf32, #tpu.memory_space<vmem>>, vector<16x128xf32>
    tpu.vector_store %arg9[%c0_121, %c0_122], %378 {strides = array<i32>} : memref<16x128xf32, #tpu.memory_space<vmem>>, vector<16x128xf32>,
    return
  }
  func.func @transform_0(%arg0: i32) -> (i32, i32) {
    %c0_i32 = arith.constant 0 : i32
    %c0_i32_0 = arith.constant 0 : i32
    return %arg0, %c0_i32 : i32, i32
  }
  func.func @transform_1(%arg0: i32) -> (i32, i32) {
    %c0_i32 = arith.constant 0 : i32
    %c0_i32_0 = arith.constant 0 : i32
    %c0_i32_1 = arith.constant 0 : i32
    return %c0_i32, %c0_i32_0 : i32, i32
  }
  func.func @transform_2(%arg0: i32) -> (i32, i32) {
    %c0_i32 = arith.constant 0 : i32
    %c0_i32_0 = arith.constant 0 : i32
    %c0_i32_1 = arith.constant 0 : i32
    return %c0_i32, %c0_i32_0 : i32, i32
  }
  func.func @transform_3(%arg0: i32) -> (i32, i32) {
    %c0_i32 = arith.constant 0 : i32
    %c0_i32_0 = arith.constant 0 : i32
    %c0_i32_1 = arith.constant 0 : i32
    return %c0_i32, %c0_i32_0 : i32, i32
  }
  func.func @transform_4(%arg0: i32) -> (i32, i32) {
    %c0_i32 = arith.constant 0 : i32
    %c0_i32_0 = arith.constant 0 : i32
    %c0_i32_1 = arith.constant 0 : i32
    return %c0_i32, %c0_i32_0 : i32, i32
  }
  func.func @transform_5(%arg0: i32) -> (i32, i32) {
    %c0_i32 = arith.constant 0 : i32
    %c0_i32_0 = arith.constant 0 : i32
    %c0_i32_1 = arith.constant 0 : i32
    return %c0_i32, %c0_i32_0 : i32, i32
  }
  func.func @transform_6(%arg0: i32) -> (i32, i32) {
    %c0_i32 = arith.constant 0 : i32
    %c0_i32_0 = arith.constant 0 : i32
    %c0_i32_1 = arith.constant 0 : i32
    return %c0_i32, %c0_i32_0 : i32, i32
  }
  func.func @transform_7(%arg0: i32) -> (i32, i32) {
    %c0_i32 = arith.constant 0 : i32
    %c0_i32_0 = arith.constant 0 : i32
    %c0_i32_1 = arith.constant 0 : i32
    return %c0_i32, %c0_i32_0 : i32, i32
  }
  func.func @transform_8(%arg0: i32) -> (i32, i32) {
    %c0_i32 = arith.constant 0 : i32
    %c0_i32_0 = arith.constant 0 : i32
    return %arg0, %c0_i32 : i32, i32
  }
}

</mosaic_0001>

<bundles_post_ra>
// kernel: tpu_custom_call.1
= control target key start
LH: loop header
LB: loop body
LE: loop exit
PB: predicated region body
PF: predicated region fallthrough
CT: control target
= control target key end

     0   :  { %13 = vsyncpa [#allocation3], 0  ;;  %s5395_s0 = inlined_call_operand.vmem [shape: f32[16,4], index: 0, kind: input, shape index: {}]   ;;  %s5396_s1 = inlined_call_operand.hbm [shape: f32[16,32], index: 1, kind: input, shape index: {}]   ;;  %s5397_s2 = inlined_call_operand.hbm [shape: f32[11,128], index: 2, kind: input, shape index: {}]   ;;  %s5398_s3 = inlined_call_operand.vmem [shape: f32[4,32], index: 3, kind: input, shape index: {}]   ;;  %s5399_s4 = inlined_call_operand.vmem [shape: f32[32,96], index: 4, kind: input, shape index: {}]   ;;  %s5400_s5 = inlined_call_operand.vmem [shape: f32[32,32], index: 5, kind: input, shape index: {}]   ;;  %s5401_s6 = inlined_call_operand.vmem [shape: f32[32,64], index: 6, kind: input, shape index: {}]   ;;  %s5402_s7 = inlined_call_operand.vmem [shape: f32[64,32], index: 7, kind: input, shape index: {}]   ;;  %s5403_s8 = inlined_call_operand.hbm [shape: f32[16,128], index: 8, kind: output, shape index: {}]  }
   0x1   :  { %14 = vsyncpa [#allocation6], 0 }
   0x2   :  { %15 = vsyncpa [#allocation4], 0  ;;  %s4693_s27 = smov [#allocation2]   ;;  %s4621_s9 = scalar_lea.hbm %s5396_s1, 256 }
   0x3   :  { %s23_s28 = sshll.u32 %s4693_s27, 4  ;;  %p4622_p0 = scmp.ne.s32.totalorder %s5396_s1, %s4621_s9  ;;  %s24_s28 = int_to_ptr.vmem [resolvable:$true] %s23_s28 }
   0x4   :  { %p4625_p1 = scmp.lt.u32.totalorder %s4621_s9, %s5396_s1 }
   0x6   :  { %p4627_p2 = pnand %p4625_p1, %p4622_p0 }
   0x8   :  { %4630 = shalt.err (!%p4627_p2)
}
   0x9   :  { %s4631_s14 = scalar_lea.vmem %s24_s28, 256  ;;  %p4636_p4 = scmp.lt.s32.totalorder %s24_s28, %s24_s28 }
   0xa   :  { %p4632_p3 = scmp.ne.s32.totalorder %s24_s28, %s4631_s14  ;;  %p4637_p5 = scmp.lt.s32.totalorder %s4631_s14, %s4631_s14 }
   0xc   :  { %p4638_p6 = por %p4637_p5, %p4636_p4 }
   0xe   :  { %p4639_p7 = pnand %p4638_p6, %p4632_p3 }
  0x10   :  { %4642 = shalt.err (!%p4639_p7)
}
  0x11   :  { %s4694_s15 = smov 128   ;;  %s4695_s16 = smov 8  }
  0x12   :  { %29 = dma.hbm_to_vmem [thread:$0]  %s5396_s1, 256, %s24_s28, [#allocation3], %s4694_s15, %s4694_s15, %s4695_s16  }
  0x13   :  { %s4696_s19 = smov [#allocation5]   ;;  %s4643_s23 = scalar_lea.hbm %s5397_s2, 256 }
  0x14   :  { %s35_s20 = sshll.u32 %s4696_s19, 4  ;;  %p4644_p8 = scmp.ne.s32.totalorder %s5397_s2, %s4643_s23  ;;  %s36_s20 = int_to_ptr.vmem [resolvable:$true] %s35_s20 }
  0x15   :  { %p4647_p9 = scmp.lt.u32.totalorder %s4643_s23, %s5397_s2 }
  0x17   :  { %p4649_p10 = pnand %p4647_p9, %p4644_p8 }
  0x19   :  { %4652 = shalt.err (!%p4649_p10)
}
  0x1a   :  { %s4653_s29 = scalar_lea.vmem %s36_s20, 256  ;;  %p4658_p12 = scmp.lt.s32.totalorder %s36_s20, %s36_s20 }
  0x1b   :  { %p4654_p11 = scmp.ne.s32.totalorder %s36_s20, %s4653_s29  ;;  %p4659_p13 = scmp.lt.s32.totalorder %s4653_s29, %s4653_s29 }
  0x1d   :  { %p4660_p0 = por %p4659_p13, %p4658_p12 }
  0x1f   :  { %p4661_p1 = pnand %p4660_p0, %p4654_p11 }
  0x21   :  { %4664 = shalt.err (!%p4661_p1)
}
  0x22   :  { %41 = dma.hbm_to_vmem [thread:$0]  %s5397_s2, 256, %s36_s20, [#allocation6], %s4694_s15, %s4694_s15, %s4695_s16  }
  0x23   :  { %4687 = dma.done.wait [#allocation3], 256  }
  0x24   :  { %4688 = vsyncadd [#allocation3], 4294967040 }
  0x25   :  { %4689 = dma.done.wait [#allocation6], 256  }
  0x26   :  { %4690 = vsyncadd [#allocation6], 4294967040  ;;  %vm96_vm0 = vcmask 1043456   ;;  %vm89_vm1 = vcmask 31744   ;;  %v64_v0 = vld [vmem:[%s5398_s3] sm:$0xf]  ;;  %v85_v3 = vlaneseq }
  0x27   :  { %v58_v1 = vld [vmem:[%s5395_s0] sm:$0xff]  ;;  %v59_v2 = vld [vmem:[%s5395_s0 + $0x8] sm:$0xff]  ;;  %4131 = vmatprep.subr.msk.mxu0 %vm96_vm0, %v64_v0  ;;  %v4801_v6 = vld [vmem:[#allocation5] sm:$0xff]  ;;  %vm175_vm2 = vcmask 261120   ;;  %v4697_v62 = vmov 0.0   ;;  %vm4698_vm7 = vmmov 0  }
  0x28   :  { %4133 = vmatprep.mubr.msk.f32.mxu0 %vm89_vm1, %v58_v1  ;;  %4132 = vmatpush3.msk.msra.mxu0 %vm96_vm0, %v64_v0  ;;  %v4798_v4 = vshrl.u32 %v85_v3, 7  ;;  %v65_v24 = vld [vmem:[%s5399_s4] sm:$0xff]  ;;  %v66_v25 = vld [vmem:[%s5399_s4 + $0x8] sm:$0xff]  ;;  %v67_v26 = vld [vmem:[%s5399_s4 + $0x10] sm:$0xff]  ;;  %vm319_vm8 = vcmask 64512   ;;  %s4700_s21 = smov 64  }
  0x29   :  { %4134 = vmatmul.mubr.msk.f32.vlgmr.msra.gmra.mrb[0].mxu0 %vm89_vm1, %v59_v2  ;;  %v4819_v27 = vpack.c.bf16 %v66_v25, %v65_v24  ;;  %v68_v28 = vld [vmem:[%s5399_s4 + $0x18] sm:$0xff]  ;;  %v60_v53 = vld [vmem:[#allocation2] sm:$0xff]  ;;  %v61_v59 = vld [vmem:[#allocation2 + $0x8] sm:$0xff]  ;;  %4157 = vmatprep.subr.mxu1 %v4697_v62  ;;  %s4699_s4 = smov 96   ;;  %s4701_s22 = smov 88   ;;  %vm1672_vm9 = vcmask 195584  }
  0x2a   :  { %v87_v5 = vsub.s32 0, %v4798_v4  ;;  %v4824_v29 = vpack.c.bf16 %v68_v28, %v67_v26  ;;  %v219_v46 = vsub.s32 1, %v4798_v4  ;;  %v225_v47 = vsub.s32 2, %v4798_v4  ;;  %4159 = vmatprep.mubr.msk.f32.mxu1 %vm4698_vm7, %v4697_v62  ;;  %s4702_s23 = smov 120   ;;  %s4703_s24 = smov 56  }
  0x2b   :  { %4401 = vmatprep.subr.bf16.mxu0 %v4819_v27  ;;  %v233_v63 = vsub.s32 3, %v4798_v4  ;;  %s4704_s25 = smov 80   ;;  %s4705_s26 = smov 112   ;;  %vm1669_vm10 = vcmask 130048   ;;  %vm1957_vm1 = vcmask 523264  }
  0x2c   :  { %v88_v7 = vrot.slane %v4801_v6, %v87_v5  ;;  %4403 = vmatpush3.bf16.msra.mxu0 %v4819_v27  ;;  %v220_v48 = vrot.slane %v4801_v6, %v219_v46  ;;  %v226_v51 = vrot.slane %v4801_v6, %v225_v47  ;;  %s4706_s27 = smov 48   ;;  %s4707_s29 = smov 72  }
  0x2d   :  { %4405 = vmatprep.subr.bf16.mxu0 %v4824_v29  ;;  %v4848_v0 = vrot.slane %v4801_v6, %v233_v63  ;;  %s4708_s1 = smov 104   ;;  %s4709_s28 = smov 40  }
  0x2e   :  { %s4710_s30 = smov 16   ;;  %s4711_s14 = smov 24  }
  0x30   :  { %4407 = vmatpush3.bf16.msra.mxu0 %v4824_v29 }
  0x31   :  { %4147 = vmatprep.subr.mxu0 %v4697_v62 }
  0xfc   :  { %v4135_v8 = vpop.f32.mrb[0].mxu0 }
  0xfd   :  { %v166_v9 = vpop.f32.mrb[1].mxu0  ;;  %v172_v11 = vadd.f32 %v4135_v8, %v88_v7 }
  0xfe   :  { %v167_v10 = vadd.f32 %v166_v9, %v88_v7 }
  0xff   :  { %v179_v13 = vsel %vm175_vm2, %v172_v11, 0.0 }
 0x100   :  { %v176_v12 = vsel %vm175_vm2, %v167_v10, 0.0 }
 0x101   :  { %177 = vadd.xlane.f32.xlu0 %v176_v12 }
 0x105   :  { %180 = vadd.xlane.f32.xlu0 %v179_v13 }
 0x18e   :  { %v178_v14 = vpop.xlane.xlu0 %177 }
 0x18f   :  { %v183_v15 = vmul.f32 0.03125, %v178_v14 }
 0x191   :  { %v185_v16 = vsub.f32 %v167_v10, %v183_v15 }
 0x192   :  { %v181_v17 = vpop.xlane.xlu0 %180 }
 0x193   :  { %v184_v18 = vmul.f32 0.03125, %v181_v17  ;;  %v187_v19 = vmul.f32 %v185_v16, %v185_v16 }
 0x195   :  { %v186_v20 = vsub.f32 %v172_v11, %v184_v18  ;;  %v189_v21 = vsel %vm175_vm2, %v187_v19, 0.0 }
 0x196   :  { %190 = vadd.xlane.f32.xlu1 %v189_v21 }
 0x197   :  { %v188_v22 = vmul.f32 %v186_v20, %v186_v20 }
 0x199   :  { %v192_v23 = vsel %vm175_vm2, %v188_v22, 0.0 }
 0x19a   :  { %193 = vadd.xlane.f32.xlu1 %v192_v23 }
 0x223   :  { %v191_v30 = vpop.xlane.xlu1 %190 }
 0x224   :  { %v195_v31 = vmul.f32 0.03125, %v191_v30 }
 0x226   :  { %v197_v32 = vadd.f32 1e-12, %v195_v31 }
 0x227   :  { %v194_v33 = vpop.xlane.xlu1 %193 }
 0x228   :  { %4501 = vrsqrt.f32 %v197_v32  ;;  %v196_v34 = vmul.f32 0.03125, %v194_v33  ;;  %vm201_vm3 = vcmp.eq.f32.partialorder %v197_v32, inf  ;;  %v204_v38 = vand.u32 2147483648, %v197_v32 }
 0x229   :  { %vm203_vm4 = vcmp.eq.f32.partialorder %v197_v32, 0.0 }
 0x22a   :  { %v198_v35 = vadd.f32 1e-12, %v196_v34 }
 0x22c   :  { %4503 = vrsqrt.f32 %v198_v35  ;;  %vm208_vm5 = vcmp.eq.f32.partialorder %v198_v35, inf  ;;  %v211_v43 = vand.u32 2147483648, %v198_v35  ;;  %vm210_vm6 = vcmp.eq.f32.partialorder %v198_v35, 0.0 }
 0x232   :  { %v4502_v36 = vpop.eup %4501 }
 0x233   :  { %v200_v37 = vmul.f32 %v4502_v36, %v197_v32 }
 0x235   :  { %v202_v39 = vsel %vm201_vm3, %v197_v32, %v200_v37 }
 0x236   :  { %v205_v40 = vsel %vm203_vm4, %v204_v38, %v202_v39  ;;  %v4504_v41 = vpop.eup %4503 }
 0x237   :  { %4505 = vrcp.f32 %v205_v40  ;;  %v207_v42 = vmul.f32 %v4504_v41, %v198_v35 }
 0x239   :  { %v209_v44 = vsel %vm208_vm5, %v198_v35, %v207_v42 }
 0x23a   :  { %v212_v45 = vsel %vm210_vm6, %v211_v43, %v209_v44 }
 0x23b   :  { %4507 = vrcp.f32 %v212_v45 }
 0x241   :  { %v4506_v49 = vpop.eup %4505 }
 0x242   :  { %v214_v50 = vmul.f32 %v4506_v49, %v185_v16 }
 0x244   :  { %v221_v52 = vmul.f32 %v220_v48, %v214_v50 }
 0x245   :  { %v4508_v54 = vpop.eup %4507 }
 0x246   :  { %v227_v55 = vadd.f32 %v226_v51, %v221_v52  ;;  %v216_v56 = vmul.f32 %v4508_v54, %v186_v20 }
 0x248   :  { %v229_v57 = vadd.f32 %v227_v55, %v60_v53  ;;  %v222_v58 = vmul.f32 %v220_v48, %v216_v56 }
 0x24a   :  { %4144 = vmatprep.mubr.msk.f32.mxu0 %vm175_vm2, %v229_v57  ;;  %v228_v60 = vadd.f32 %v226_v51, %v222_v58 }
 0x24c   :  { %v230_v61 = vadd.f32 %v228_v60, %v61_v59 }
 0x24e   :  { %4145 = vmatmul.mubr.msk.f32.vlgmr.msra.gmra.mrb[2].mxu0 %vm175_vm2, %v230_v61 }
 0x24f   :  { %4149 = vmatprep.mubr.msk.f32.mxu0 %vm4698_vm7, %v4697_v62 }
 0x321   :  { %v4146_v1 = vpop.f32.mrb[2].mxu0 }
 0x322   :  { %v4851_v2 = vadd.f32 %v4146_v1, %v4848_v0  ;;  %v307_v3 = vpop.f32.mrb[3].mxu0 }
 0x323   :  { %v4854_v7 = vadd.f32 %v307_v3, %v4848_v0 }
 0x324   :  { %395 = vrot.lane.b32.xlu1 %v4851_v2, %s4699_s4 }
 0x325   :  { %317 = vrot.lane.b32.xlu0 %v4854_v7, %s4699_s4 }
 0x396   :  { %v396_v9 = vpop.permute.xlu1 %395 }
 0x397   :  { %v318_v8 = vpop.permute.xlu0 %317 }
 0x398   :  { %4148 = vmatpush3.xpose.msk.msra.mxu0 %vm319_vm8, %v318_v8 }
 0x399   :  { %4152 = vmatprep.subr.mxu0 %v4697_v62 }
 0x39b   :  { %4150 = vmatmul.mubr.msk.f32.vlgmr.msra.gmra.mrb[4].mxu0 %vm319_vm8, %v4854_v7 }
 0x39c   :  { %4153 = vmatpush3.xpose.msk.msra.mxu0 %vm319_vm8, %v396_v9  ;;  %4154 = vmatprep.mubr.msk.f32.mxu0 %vm4698_vm7, %v4697_v62 }
 0x39d   :  { %4162 = vmatprep.subr.mxu0 %v4697_v62 }
 0x39f   :  { %4155 = vmatmul.mubr.msk.f32.vlgmr.msra.gmra.mrb[6].mxu0 %vm319_vm8, %v4851_v2 }
 0x3a0   :  { %4164 = vmatprep.mubr.msk.f32.mxu0 %vm4698_vm7, %v4697_v62 }
 0x46e   :  { %v390_v10 = vpop.f32.mrb[4].mxu0 }
 0x46f   :  { %v471_v11 = vmul.f32 0.35355338, %v390_v10  ;;  %v4151_v12 = vpop.f32.mrb[5].mxu0 }
 0x471   :  { %v473_v13 = vsel %vm319_vm8, %v471_v11, -inf }
 0x472   :  { %474 = vmax.xlane.f32.xlu1 %v473_v13  ;;  %v467_v14 = vpop.f32.mrb[6].mxu0 }
 0x473   :  { %v472_v15 = vmul.f32 0.35355338, %v467_v14  ;;  %v4156_v16 = vpop.f32.mrb[7].mxu0 }
 0x475   :  { %v476_v17 = vsel %vm319_vm8, %v472_v15, -inf }
 0x476   :  { %477 = vmax.xlane.f32.xlu0 %v476_v17 }
 0x483   :  { %571 = vrot.lane.b32.xlu1 %v4851_v2, %s4700_s21 }
 0x487   :  { %649 = vrot.lane.b32.xlu1 %v4854_v7, %s4701_s22 }
 0x48b   :  { %727 = vrot.lane.b32.xlu1 %v4851_v2, %s4701_s22 }
 0x48c   :  { %495 = vrot.lane.b32.xlu0 %v4854_v7, %s4700_s21 }
 0x4ff   :  { %v475_v18 = vpop.xlane.xlu1 %474 }
 0x500   :  { %v479_v19 = vsub.f32 %v471_v11, %v475_v18 }
 0x502   :  { %v481_v20 = vmul.f32 1.442695, %v479_v19 }
 0x503   :  { %v572_v21 = vpop.permute.xlu1 %571  ;;  %v478_v22 = vpop.xlane.xlu0 %477 }
 0x504   :  { %4509 = vpow2.f32 %v481_v20  ;;  %v480_v23 = vsub.f32 %v472_v15, %v478_v22  ;;  %4163 = vmatpush3.msra.mxu0 %v572_v21 }
 0x505   :  { %4172 = vmatprep.subr.mxu0 %v4697_v62 }
 0x506   :  { %v483_v24 = vmul.f32 1.442695, %v480_v23 }
 0x507   :  { %v496_v25 = vpop.permute.xlu0 %495  ;;  %v650_v32 = vpop.permute.xlu1 %649 }
 0x508   :  { %4511 = vpow2.f32 %v483_v24  ;;  %4158 = vmatpush3.msra.mxu1 %v496_v25 }
 0x509   :  { %4167 = vmatprep.subr.mxu1 %v4697_v62 }
 0x50b   :  { %v728_v33 = vpop.permute.xlu1 %727 }
 0x50e   :  { %v4510_v26 = vpop.eup %4509 }
 0x50f   :  { %v485_v28 = vsel %vm319_vm8, %v4510_v26, 0.0 }
 0x510   :  { %486 = vadd.xlane.f32.xlu0 %v485_v28 }
 0x512   :  { %v4512_v30 = vpop.eup %4511 }
 0x513   :  { %v488_v31 = vsel %vm319_vm8, %v4512_v30, 0.0 }
 0x514   :  { %489 = vadd.xlane.f32.xlu1 %v488_v31 }
 0x525   :  { %725 = vrot.lane.b32.xlu1 %v4851_v2, %s4702_s23 }
 0x526   :  { %647 = vrot.lane.b32.xlu0 %v4854_v7, %s4702_s23 }
 0x59d   :  { %v487_v34 = vpop.xlane.xlu0 %486 }
 0x59e   :  { %4513 = vrcp.f32 %v487_v34 }
 0x5a1   :  { %v490_v35 = vpop.xlane.xlu1 %489  ;;  %v648_v40 = vpop.permute.xlu0 %647 }
 0x5a2   :  { %4515 = vrcp.f32 %v490_v35 }
 0x5a5   :  { %v726_v41 = vpop.permute.xlu1 %725 }
 0x5a8   :  { %v4514_v36 = vpop.eup %4513 }
 0x5a9   :  { %v492_v37 = vmul.f32 %v4514_v36, %v4510_v26 }
 0x5ab   :  { %4160 = vmatmul.mubr.msk.f32.vlgmr.msra.gmra.mrb[0].mxu1 %vm319_vm8, %v492_v37 }
 0x5ac   :  { %v4516_v38 = vpop.eup %4515  ;;  %4168 = vmatpush3.xpose.msk.msra.mxu1 %vm319_vm8, %v650_v32  ;;  %4169 = vmatprep.mubr.msk.f32.mxu1 %vm4698_vm7, %v4697_v62 }
 0x5ad   :  { %v494_v39 = vmul.f32 %v4516_v38, %v4512_v30  ;;  %4177 = vmatprep.subr.mxu1 %v4697_v62 }
 0x5af   :  { %4165 = vmatmul.mubr.msk.f32.vlgmr.msra.gmra.mrb[8].mxu0 %vm319_vm8, %v494_v39  ;;  %4170 = vmatmul.mubr.msk.f32.vlgmr.msra.gmra.mrb[2].mxu1 %vm319_vm8, %v648_v40 }
 0x5b0   :  { %4173 = vmatpush3.xpose.msk.msra.mxu0 %vm319_vm8, %v728_v33  ;;  %4174 = vmatprep.mubr.msk.f32.mxu0 %vm4698_vm7, %v4697_v62 }
 0x5b1   :  { %4182 = vmatprep.subr.mxu0 %v4697_v62  ;;  %4179 = vmatprep.mubr.msk.f32.mxu1 %vm4698_vm7, %v4697_v62 }
 0x5b3   :  { %4175 = vmatmul.mubr.msk.f32.vlgmr.msra.gmra.mrb[10].mxu0 %vm319_vm8, %v726_v41 }
 0x5b4   :  { %4184 = vmatprep.mubr.msk.f32.mxu0 %vm4698_vm7, %v4697_v62 }
 0x67e   :  { %v4906_v42 = vpop.f32.mrb[0].mxu1 }
 0x67f   :  { %v4161_v43 = vpop.f32.mrb[1].mxu1 }
 0x682   :  { %v4908_v44 = vpop.f32.mrb[8].mxu0  ;;  %v721_v45 = vpop.f32.mrb[2].mxu1 }
 0x683   :  { %v803_v48 = vmul.f32 0.35355338, %v721_v45  ;;  %v4166_v49 = vpop.f32.mrb[9].mxu0  ;;  %v4171_v50 = vpop.f32.mrb[3].mxu1 }
 0x685   :  { %v805_v51 = vsel %vm319_vm8, %v803_v48, -inf }
 0x686   :  { %806 = vmax.xlane.f32.xlu0 %v805_v51  ;;  %v799_v52 = vpop.f32.mrb[10].mxu0 }
 0x687   :  { %v804_v53 = vmul.f32 0.35355338, %v799_v52  ;;  %v4176_v54 = vpop.f32.mrb[11].mxu0 }
 0x689   :  { %v808_v55 = vsel %vm319_vm8, %v804_v53, -inf }
 0x68a   :  { %809 = vmax.xlane.f32.xlu1 %v808_v55 }
 0x69b   :  { %903 = vrot.lane.b32.xlu1 %v4851_v2, %s4703_s24 }
 0x69c   :  { %827 = vrot.lane.b32.xlu0 %v4854_v7, %s4703_s24 }
 0x69f   :  { %981 = vrot.lane.b32.xlu1 %v4854_v7, %s4704_s25 }
 0x6a3   :  { %1059 = vrot.lane.b32.xlu1 %v4851_v2, %s4704_s25 }
 0x6a7   :  { %1057 = vrot.lane.b32.xlu1 %v4851_v2, %s4705_s26 }
 0x713   :  { %v807_v56 = vpop.xlane.xlu0 %806 }
 0x714   :  { %v811_v57 = vsub.f32 %v803_v48, %v807_v56 }
 0x716   :  { %v813_v58 = vmul.f32 1.442695, %v811_v57 }
 0x717   :  { %v828_v59 = vpop.permute.xlu0 %827  ;;  %v810_v60 = vpop.xlane.xlu1 %809 }
 0x718   :  { %4517 = vpow2.f32 %v813_v58  ;;  %v812_v61 = vsub.f32 %v804_v53, %v810_v60  ;;  %4178 = vmatpush3.msra.mxu1 %v828_v59 }
 0x719   :  { %4187 = vmatprep.subr.mxu1 %v4697_v62 }
 0x71a   :  { %v815_v63 = vmul.f32 1.442695, %v812_v61 }
 0x71b   :  { %v904_v1 = vpop.permute.xlu1 %903 }
 0x71c   :  { %4519 = vpow2.f32 %v815_v63  ;;  %4183 = vmatpush3.msra.mxu0 %v904_v1 }
 0x71d   :  { %4192 = vmatprep.subr.mxu0 %v4697_v62 }
 0x71f   :  { %v982_v13 = vpop.permute.xlu1 %981 }
 0x722   :  { %v4518_v3 = vpop.eup %4517 }
 0x723   :  { %v817_v8 = vsel %vm319_vm8, %v4518_v3, 0.0  ;;  %v1060_v17 = vpop.permute.xlu1 %1059 }
 0x724   :  { %818 = vadd.xlane.f32.xlu0 %v817_v8 }
 0x726   :  { %v4520_v9 = vpop.eup %4519 }
 0x727   :  { %v820_v10 = vsel %vm319_vm8, %v4520_v9, 0.0  ;;  %v1058_v20 = vpop.permute.xlu1 %1057 }
 0x728   :  { %821 = vadd.xlane.f32.xlu0 %v820_v10 }
 0x73e   :  { %979 = vrot.lane.b32.xlu0 %v4854_v7, %s4705_s26 }
 0x7b1   :  { %v819_v11 = vpop.xlane.xlu0 %818 }
 0x7b2   :  { %4521 = vrcp.f32 %v819_v11 }
 0x7b5   :  { %v822_v12 = vpop.xlane.xlu0 %821 }
 0x7b6   :  { %4523 = vrcp.f32 %v822_v12 }
 0x7b9   :  { %v980_v19 = vpop.permute.xlu0 %979 }
 0x7bc   :  { %v4522_v14 = vpop.eup %4521 }
 0x7bd   :  { %v824_v15 = vmul.f32 %v4522_v14, %v4518_v3 }
 0x7bf   :  { %4180 = vmatmul.mubr.msk.f32.vlgmr.msra.gmra.mrb[4].mxu1 %vm319_vm8, %v824_v15 }
 0x7c0   :  { %v4524_v16 = vpop.eup %4523  ;;  %4188 = vmatpush3.xpose.msk.msra.mxu1 %vm319_vm8, %v982_v13  ;;  %4189 = vmatprep.mubr.msk.f32.mxu1 %vm4698_vm7, %v4697_v62 }
 0x7c1   :  { %v826_v18 = vmul.f32 %v4524_v16, %v4520_v9  ;;  %4197 = vmatprep.subr.mxu1 %v4697_v62 }
 0x7c3   :  { %4185 = vmatmul.mubr.msk.f32.vlgmr.msra.gmra.mrb[12].mxu0 %vm319_vm8, %v826_v18  ;;  %4190 = vmatmul.mubr.msk.f32.vlgmr.msra.gmra.mrb[6].mxu1 %vm319_vm8, %v980_v19 }
 0x7c4   :  { %4193 = vmatpush3.xpose.msk.msra.mxu0 %vm319_vm8, %v1060_v17  ;;  %4194 = vmatprep.mubr.msk.f32.mxu0 %vm4698_vm7, %v4697_v62 }
 0x7c5   :  { %4202 = vmatprep.subr.mxu0 %v4697_v62  ;;  %4199 = vmatprep.mubr.msk.f32.mxu1 %vm4698_vm7, %v4697_v62 }
 0x7c7   :  { %4195 = vmatmul.mubr.msk.f32.vlgmr.msra.gmra.mrb[14].mxu0 %vm319_vm8, %v1058_v20 }
 0x7c8   :  { %4204 = vmatprep.mubr.msk.f32.mxu0 %vm4698_vm7, %v4697_v62 }
 0x892   :  { %v4944_v21 = vpop.f32.mrb[4].mxu1 }
 0x893   :  { %v4181_v22 = vpop.f32.mrb[5].mxu1 }
 0x896   :  { %v4946_v23 = vpop.f32.mrb[12].mxu0  ;;  %v1053_v24 = vpop.f32.mrb[6].mxu1 }
 0x897   :  { %v1135_v25 = vmul.f32 0.35355338, %v1053_v24  ;;  %v4186_v26 = vpop.f32.mrb[13].mxu0  ;;  %v4191_v28 = vpop.f32.mrb[7].mxu1 }
 0x899   :  { %v1137_v30 = vsel %vm319_vm8, %v1135_v25, -inf }
 0x89a   :  { %1138 = vmax.xlane.f32.xlu0 %v1137_v30  ;;  %v1131_v31 = vpop.f32.mrb[14].mxu0 }
 0x89b   :  { %v1136_v32 = vmul.f32 0.35355338, %v1131_v31  ;;  %v4196_v33 = vpop.f32.mrb[15].mxu0 }
 0x89d   :  { %v1140_v34 = vsel %vm319_vm8, %v1136_v32, -inf }
 0x89e   :  { %1141 = vmax.xlane.f32.xlu1 %v1140_v34 }
 0x8af   :  { %1235 = vrot.lane.b32.xlu1 %v4851_v2, %s4706_s27 }
 0x8b0   :  { %1159 = vrot.lane.b32.xlu0 %v4854_v7, %s4706_s27 }
 0x8b3   :  { %1313 = vrot.lane.b32.xlu1 %v4854_v7, %s4707_s29 }
 0x8b7   :  { %1391 = vrot.lane.b32.xlu1 %v4851_v2, %s4707_s29 }
 0x8bb   :  { %1389 = vrot.lane.b32.xlu1 %v4851_v2, %s4708_s1 }
 0x927   :  { %v1139_v35 = vpop.xlane.xlu0 %1138 }
 0x928   :  { %v1143_v36 = vsub.f32 %v1135_v25, %v1139_v35  ;;  %v70_v35 = vld [vmem:[%s5400_s5 + $0x8] sm:$0xff] }
 0x92a   :  { %v1145_v37 = vmul.f32 1.442695, %v1143_v36 }
 0x92b   :  { %v1160_v38 = vpop.permute.xlu0 %1159  ;;  %v1142_v39 = vpop.xlane.xlu1 %1141 }
 0x92c   :  { %4525 = vpow2.f32 %v1145_v37  ;;  %v1144_v40 = vsub.f32 %v1136_v32, %v1142_v39  ;;  %4198 = vmatpush3.msra.mxu1 %v1160_v38  ;;  %v71_v37 = vld [vmem:[%s5400_s5 + $0x10] sm:$0xff]  ;;  %v72_v38 = vld [vmem:[%s5400_s5 + $0x18] sm:$0xff] }
 0x92d   :  { %4207 = vmatprep.subr.mxu1 %v4697_v62  ;;  %v5014_v39 = vpack.c.bf16 %v72_v38, %v71_v37 }
 0x92e   :  { %v1147_v41 = vmul.f32 1.442695, %v1144_v40 }
 0x92f   :  { %v1236_v43 = vpop.permute.xlu1 %1235 }
 0x930   :  { %4527 = vpow2.f32 %v1147_v41  ;;  %4203 = vmatpush3.msra.mxu0 %v1236_v43 }
 0x931   :  { %4212 = vmatprep.subr.mxu0 %v4697_v62 }
 0x933   :  { %v1314_v53 = vpop.permute.xlu1 %1313 }
 0x936   :  { %v4526_v45 = vpop.eup %4525 }
 0x937   :  { %v1149_v48 = vsel %vm319_vm8, %v4526_v45, 0.0  ;;  %v1392_v57 = vpop.permute.xlu1 %1391 }
 0x938   :  { %1150 = vadd.xlane.f32.xlu0 %v1149_v48 }
 0x93a   :  { %v4528_v49 = vpop.eup %4527 }
 0x93b   :  { %v1152_v50 = vsel %vm319_vm8, %v4528_v49, 0.0  ;;  %v1390_v60 = vpop.permute.xlu1 %1389 }
 0x93c   :  { %1153 = vadd.xlane.f32.xlu0 %v1152_v50 }
 0x952   :  { %1311 = vrot.lane.b32.xlu0 %v4854_v7, %s4708_s1 }
 0x9c5   :  { %v1151_v51 = vpop.xlane.xlu0 %1150 }
 0x9c6   :  { %4529 = vrcp.f32 %v1151_v51 }
 0x9c9   :  { %v1154_v52 = vpop.xlane.xlu0 %1153 }
 0x9ca   :  { %4531 = vrcp.f32 %v1154_v52 }
 0x9cd   :  { %v1312_v59 = vpop.permute.xlu0 %1311 }
 0x9d0   :  { %v4530_v54 = vpop.eup %4529 }
 0x9d1   :  { %v1156_v55 = vmul.f32 %v4530_v54, %v4526_v45 }
 0x9d3   :  { %4200 = vmatmul.mubr.msk.f32.vlgmr.msra.gmra.mrb[8].mxu1 %vm319_vm8, %v1156_v55 }
 0x9d4   :  { %v4532_v56 = vpop.eup %4531  ;;  %4208 = vmatpush3.xpose.msk.msra.mxu1 %vm319_vm8, %v1314_v53  ;;  %4209 = vmatprep.mubr.msk.f32.mxu1 %vm4698_vm7, %v4697_v62 }
 0x9d5   :  { %v1158_v58 = vmul.f32 %v4532_v56, %v4528_v49  ;;  %4217 = vmatprep.subr.mxu1 %v4697_v62 }
 0x9d7   :  { %4205 = vmatmul.mubr.msk.f32.vlgmr.msra.gmra.mrb[16].mxu0 %vm319_vm8, %v1158_v58  ;;  %4210 = vmatmul.mubr.msk.f32.vlgmr.msra.gmra.mrb[10].mxu1 %vm319_vm8, %v1312_v59 }
 0x9d8   :  { %4213 = vmatpush3.xpose.msk.msra.mxu0 %vm319_vm8, %v1392_v57  ;;  %4214 = vmatprep.mubr.msk.f32.mxu0 %vm4698_vm7, %v4697_v62 }
 0x9d9   :  { %4222 = vmatprep.subr.mxu0 %v4697_v62  ;;  %4219 = vmatprep.mubr.msk.f32.mxu1 %vm4698_vm7, %v4697_v62 }
 0x9db   :  { %4215 = vmatmul.mubr.msk.f32.vlgmr.msra.gmra.mrb[18].mxu0 %vm319_vm8, %v1390_v60 }
 0x9dc   :  { %4224 = vmatprep.mubr.msk.f32.mxu0 %vm4698_vm7, %v4697_v62 }
 0xaa6   :  { %v1231_v61 = vpop.f32.mrb[8].mxu1 }
 0xaa7   :  { %v4201_v63 = vpop.f32.mrb[9].mxu1 }
 0xaaa   :  { %v1307_v1 = vpop.f32.mrb[16].mxu0  ;;  %v1385_v3 = vpop.f32.mrb[10].mxu1 }
 0xaab   :  { %v1467_v8 = vmul.f32 0.35355338, %v1385_v3  ;;  %v4206_v9 = vpop.f32.mrb[17].mxu0  ;;  %v4211_v10 = vpop.f32.mrb[11].mxu1 }
 0xaad   :  { %v1469_v11 = vsel %vm319_vm8, %v1467_v8, -inf }
 0xaae   :  { %1470 = vmax.xlane.f32.xlu0 %v1469_v11  ;;  %v1463_v12 = vpop.f32.mrb[18].mxu0 }
 0xaaf   :  { %v1468_v13 = vmul.f32 0.35355338, %v1463_v12  ;;  %v4216_v14 = vpop.f32.mrb[19].mxu0 }
 0xab1   :  { %v1472_v15 = vsel %vm319_vm8, %v1468_v13, -inf }
 0xab2   :  { %1473 = vmax.xlane.f32.xlu1 %v1472_v15 }
 0xac3   :  { %1567 = vrot.lane.b32.xlu1 %v4851_v2, %s4709_s28 }
 0xac7   :  { %1645 = vrot.lane.b32.xlu1 %v4944_v21, %s4695_s16 }
 0xacb   :  { %1647 = vrot.lane.b32.xlu1 %v4946_v23, %s4695_s16 }
 0xacf   :  { %1655 = vrot.lane.b32.xlu1 %v1307_v1, %s4710_s30 }
 0xb3b   :  { %v1471_v16 = vpop.xlane.xlu0 %1470 }
 0xb3c   :  { %v1475_v17 = vsub.f32 %v1467_v8, %v1471_v16 }
 0xb3e   :  { %v1477_v18 = vmul.f32 1.442695, %v1475_v17 }
 0xb3f   :  { %v1474_v19 = vpop.xlane.xlu1 %1473 }
 0xb40   :  { %4533 = vpow2.f32 %v1477_v18  ;;  %v1476_v20 = vsub.f32 %v1468_v13, %v1474_v19 }
 0xb42   :  { %v1479_v22 = vmul.f32 1.442695, %v1476_v20 }
 0xb43   :  { %v1568_v24 = vpop.permute.xlu1 %1567 }
 0xb44   :  { %4535 = vpow2.f32 %v1479_v22  ;;  %4223 = vmatpush3.msra.mxu0 %v1568_v24  ;;  %v73_v22 = vld [vmem:[%s5401_s6] sm:$0xff]  ;;  %v74_v24 = vld [vmem:[%s5401_s6 + $0x8] sm:$0xff] }
 0xb47   :  { %v1646_v48 = vpop.permute.xlu1 %1645 }
 0xb48   :  { %v1667_v51 = vsel %vm319_vm8, %v4906_v42, %v1646_v48  ;;  %v1677_v42 = vsub.s32 4, %v4798_v4 }
 0xb4a   :  { %v4534_v2 = vpop.eup %4533  ;;  %v5032_v60 = vrot.slane %v4801_v6, %v1677_v42 }
 0xb4b   :  { %v1481_v25 = vsel %vm319_vm8, %v4534_v2, 0.0  ;;  %v1648_v49 = vpop.permute.xlu1 %1647 }
 0xb4c   :  { %1482 = vadd.xlane.f32.xlu0 %v1481_v25  ;;  %v1668_v56 = vsel %vm319_vm8, %v4908_v44, %v1648_v49  ;;  %v5049_v25 = vpack.c.bf16 %v74_v24, %v73_v22  ;;  %v1804_v49 = vsub.s32 5, %v4798_v4 }
 0xb4e   :  { %v4536_v21 = vpop.eup %4535  ;;  %4417 = vmatprep.subr.bf16.mxu0 %v5049_v25 }
 0xb4f   :  { %v1484_v23 = vsel %vm319_vm8, %v4536_v21, 0.0  ;;  %v1656_v52 = vpop.permute.xlu1 %1655 }
 0xb50   :  { %1485 = vadd.xlane.f32.xlu0 %v1484_v23  ;;  %v1671_v57 = vsel %vm1669_vm10, %v1668_v56, %v1656_v52 }
 0xb66   :  { %1491 = vrot.lane.b32.xlu0 %v4854_v7, %s4709_s28  ;;  %v69_v7 = vld [vmem:[%s5400_s5] sm:$0xff] }
 0xb67   :  { %v5004_v36 = vpack.c.bf16 %v70_v35, %v69_v7 }
 0xb6a   :  { %1653 = vrot.lane.b32.xlu0 %v1231_v61, %s4710_s30 }
 0xbd9   :  { %v1483_v26 = vpop.xlane.xlu0 %1482 }
 0xbda   :  { %4537 = vrcp.f32 %v1483_v26 }
 0xbdd   :  { %v1486_v28 = vpop.xlane.xlu0 %1485 }
 0xbde   :  { %4539 = vrcp.f32 %v1486_v28 }
 0xbe1   :  { %v1492_v30 = vpop.permute.xlu0 %1491 }
 0xbe2   :  { %4218 = vmatpush3.msra.mxu1 %v1492_v30 }
 0xbe3   :  { %4409 = vmatprep.subr.bf16.mxu1 %v5004_v36 }
 0xbe4   :  { %v4538_v31 = vpop.eup %4537 }
 0xbe5   :  { %v1488_v32 = vmul.f32 %v4538_v31, %v4534_v2  ;;  %v1654_v50 = vpop.permute.xlu0 %1653  ;;  %v75_v2 = vld [vmem:[%s5401_s6 + $0x10] sm:$0xff] }
 0xbe6   :  { %v1670_v53 = vsel %vm1669_vm10, %v1667_v51, %v1654_v50  ;;  %v1810_v50 = vsub.s32 6, %v4798_v4  ;;  %v5064_v51 = vrot.slane %v4801_v6, %v1804_v49 }
 0xbe7   :  { %4220 = vmatmul.mubr.msk.f32.vlgmr.msra.gmra.mrb[12].mxu1 %vm319_vm8, %v1488_v32 }
 0xbe8   :  { %v4540_v33 = vpop.eup %4539  ;;  %4411 = vmatpush3.bf16.msra.mxu1 %v5004_v36 }
 0xbe9   :  { %v1490_v34 = vmul.f32 %v4540_v33, %v4536_v21  ;;  %4413 = vmatprep.subr.bf16.mxu1 %v5014_v39  ;;  %v76_v21 = vld [vmem:[%s5401_s6 + $0x18] sm:$0xff] }
 0xbea   :  { %v5054_v23 = vpack.c.bf16 %v76_v21, %v75_v2 }
 0xbeb   :  { %4225 = vmatmul.mubr.msk.f32.vlgmr.msra.gmra.mrb[20].mxu0 %vm319_vm8, %v1490_v34 }
 0xbec   :  { %4415 = vmatpush3.bf16.msra.mxu1 %v5014_v39  ;;  %4419 = vmatpush3.bf16.msra.mxu0 %v5049_v25 }
 0xbed   :  { %4421 = vmatprep.subr.bf16.mxu0 %v5054_v23 }
 0xbf0   :  { %4423 = vmatpush3.bf16.msra.mxu0 %v5054_v23 }
 0xbf1   :  { %4441 = vmatprep.subr.bf16.mxu0 %v4819_v27 }
 0xcba   :  { %v1563_v40 = vpop.f32.mrb[12].mxu1 }
 0xcbb   :  { %1661 = vrot.lane.b32.xlu0 %v1563_v40, %s4711_s14  ;;  %v4221_v41 = vpop.f32.mrb[13].mxu1 }
 0xcbe   :  { %v1639_v43 = vpop.f32.mrb[20].mxu0 }
 0xcbf   :  { %1663 = vrot.lane.b32.xlu1 %v1639_v43, %s4711_s14  ;;  %v4226_v45 = vpop.f32.mrb[21].mxu0 }
 0xd2d   :  { %v1662_v54 = vpop.permute.xlu0 %1661 }
 0xd2e   :  { %v1673_v55 = vsel %vm1672_vm9, %v1670_v53, %v1662_v54  ;;  %v5067_v54 = vrot.slane %v4801_v6, %v1810_v50 }
 0xd2f   :  { %4235 = vmatprep.mubr.msk.f32.mxu1 %vm175_vm2, %v1673_v55 }
 0xd31   :  { %v1664_v58 = vpop.permute.xlu1 %1663 }
 0xd32   :  { %v1674_v59 = vsel %vm1672_vm9, %v1671_v57, %v1664_v58 }
 0xd33   :  { %4236 = vmatmul.mubr.msk.f32.vlgmr.msra.gmra.mrb[14].mxu1 %vm175_vm2, %v1674_v59 }
 0xe06   :  { %v4237_v61 = vpop.f32.mrb[14].mxu1 }
 0xe07   :  { %v1757_v63 = vadd.f32 %v4237_v61, %v5032_v60  ;;  %v1751_v1 = vpop.f32.mrb[15].mxu1  ;;  %v77_v61 = vld [vmem:[%s5402_s7] sm:$0xff] }
 0xe08   :  { %v1752_v3 = vadd.f32 %v1751_v1, %v5032_v60 }
 0xe09   :  { %v1761_v8 = vadd.f32 %v1757_v63, %v1674_v59  ;;  %v78_v63 = vld [vmem:[%s5402_s7 + $0x8] sm:$0xff] }
 0xe0a   :  { %v1760_v44 = vadd.f32 %v1752_v3, %v1673_v55  ;;  %v5091_v1 = vpack.c.bf16 %v78_v63, %v77_v61 }
 0xe0b   :  { %v1765_v9 = vsel %vm175_vm2, %v1761_v8, 0.0 }
 0xe0c   :  { %1766 = vadd.xlane.f32.xlu1 %v1765_v9  ;;  %v1762_v10 = vsel %vm175_vm2, %v1760_v44, 0.0  ;;  %4425 = vmatprep.subr.bf16.mxu1 %v5091_v1 }
 0xe0d   :  { %1763 = vadd.xlane.f32.xlu0 %v1762_v10  ;;  %4427 = vmatpush3.bf16.msra.mxu1 %v5091_v1  ;;  %v83_v10 = vld [vmem:[%s5402_s7 + $0x30] sm:$0xff] }
 0xe99   :  { %v1767_v11 = vpop.xlane.xlu1 %1766 }
 0xe9a   :  { %v1769_v12 = vmul.f32 0.03125, %v1767_v11  ;;  %v1764_v13 = vpop.xlane.xlu0 %1763  ;;  %v84_v11 = vld [vmem:[%s5402_s7 + $0x38] sm:$0xff] }
 0xe9b   :  { %v1768_v14 = vmul.f32 0.03125, %v1764_v13  ;;  %v1816_v13 = vsub.s32 7, %v4798_v4 }
 0xe9c   :  { %v1771_v15 = vsub.f32 %v1761_v8, %v1769_v12  ;;  %v81_v8 = vld [vmem:[%s5402_s7 + $0x20] sm:$0xff]  ;;  %v5121_v12 = vpack.c.bf16 %v84_v11, %v83_v10 }
 0xe9d   :  { %v1770_v16 = vsub.f32 %v1760_v44, %v1768_v14  ;;  %v82_v44 = vld [vmem:[%s5402_s7 + $0x28] sm:$0xff]  ;;  %v5128_v14 = vrot.slane %v4801_v6, %v1816_v13  ;;  %v4712_v13 = vmov -1.0  }
 0xe9e   :  { %v1773_v19 = vmul.f32 %v1771_v15, %v1771_v15  ;;  %v5111_v9 = vpack.c.bf16 %v82_v44, %v81_v8 }
 0xe9f   :  { %v1772_v17 = vmul.f32 %v1770_v16, %v1770_v16 }
 0xea0   :  { %v1777_v20 = vsel %vm175_vm2, %v1773_v19, 0.0 }
 0xea1   :  { %v1774_v18 = vsel %vm175_vm2, %v1772_v17, 0.0 }
 0xea2   :  { %1775 = vadd.xlane.f32.xlu0 %v1774_v18 }
 0xea6   :  { %1778 = vadd.xlane.f32.xlu0 %v1777_v20 }
 0xf2f   :  { %v1776_v26 = vpop.xlane.xlu0 %1775 }
 0xf30   :  { %v1780_v28 = vmul.f32 0.03125, %v1776_v26 }
 0xf32   :  { %v1782_v30 = vadd.f32 1e-12, %v1780_v28 }
 0xf33   :  { %v1779_v31 = vpop.xlane.xlu0 %1778 }
 0xf34   :  { %4541 = vrsqrt.f32 %v1782_v30  ;;  %v1781_v32 = vmul.f32 0.03125, %v1779_v31  ;;  %vm1786_vm11 = vcmp.eq.f32.partialorder %v1782_v30, inf  ;;  %v1789_v35 = vand.u32 2147483648, %v1782_v30 }
 0xf35   :  { %vm1788_vm12 = vcmp.eq.f32.partialorder %v1782_v30, 0.0 }
 0xf36   :  { %v1783_v33 = vadd.f32 1e-12, %v1781_v32 }
 0xf38   :  { %4543 = vrsqrt.f32 %v1783_v33  ;;  %vm1793_vm13 = vcmp.eq.f32.partialorder %v1783_v33, inf  ;;  %v1796_v43 = vand.u32 2147483648, %v1783_v33  ;;  %vm1795_vm14 = vcmp.eq.f32.partialorder %v1783_v33, 0.0 }
 0xf3e   :  { %v4542_v34 = vpop.eup %4541 }
 0xf3f   :  { %v1785_v7 = vmul.f32 %v4542_v34, %v1782_v30 }
 0xf41   :  { %v1787_v37 = vsel %vm1786_vm11, %v1782_v30, %v1785_v7 }
 0xf42   :  { %v1790_v38 = vsel %vm1788_vm12, %v1789_v35, %v1787_v37  ;;  %v4544_v40 = vpop.eup %4543 }
 0xf43   :  { %4545 = vrcp.f32 %v1790_v38  ;;  %v1792_v41 = vmul.f32 %v4544_v40, %v1783_v33 }
 0xf45   :  { %v1794_v45 = vsel %vm1793_vm13, %v1783_v33, %v1792_v41 }
 0xf46   :  { %v1797_v48 = vsel %vm1795_vm14, %v1796_v43, %v1794_v45 }
 0xf47   :  { %4547 = vrcp.f32 %v1797_v48 }
 0xf4d   :  { %v4546_v52 = vpop.eup %4545 }
 0xf4e   :  { %v1799_v53 = vmul.f32 %v4546_v52, %v1770_v16 }
 0xf50   :  { %v1806_v55 = vmul.f32 %v5064_v51, %v1799_v53 }
 0xf51   :  { %v4548_v56 = vpop.eup %4547 }
 0xf52   :  { %v5071_v57 = vadd.f32 %v5067_v54, %v1806_v55  ;;  %v1801_v58 = vmul.f32 %v4548_v56, %v1771_v15 }
 0xf54   :  { %4246 = vmatprep.mubr.msk.f32.mxu0 %vm175_vm2, %v5071_v57  ;;  %v1807_v59 = vmul.f32 %v5064_v51, %v1801_v58 }
 0xf56   :  { %v5077_v42 = vadd.f32 %v5067_v54, %v1807_v59 }
 0xf58   :  { %4247 = vmatmul.mubr.msk.f32.vlgmr.msra.gmra.mrb[22].mxu0 %vm175_vm2, %v5077_v42 }
 0xf59   :  { %4443 = vmatpush3.bf16.msra.mxu0 %v4819_v27  ;;  %v79_v27 = vld [vmem:[%s5402_s7 + $0x10] sm:$0xff] }
 0xf5a   :  { %4445 = vmatprep.subr.bf16.mxu0 %v4824_v29 }
 0xf5d   :  { %4447 = vmatpush3.bf16.msra.mxu0 %v4824_v29  ;;  %v80_v29 = vld [vmem:[%s5402_s7 + $0x18] sm:$0xff]  ;;  %s4713_s7 = smov [#allocation7]  }
 0xf5e   :  { %4279 = vmatprep.subr.mxu0 %v4697_v62  ;;  %v5101_v3 = vpack.c.bf16 %v80_v29, %v79_v27 }
 0xf60   :  { %4429 = vmatprep.subr.bf16.mxu1 %v5101_v3 }
 0xf61   :  { %4431 = vmatpush3.bf16.msra.mxu1 %v5101_v3 }
 0xf62   :  { %4433 = vmatprep.subr.bf16.mxu1 %v5111_v9 }
 0xf65   :  { %4435 = vmatpush3.bf16.msra.mxu1 %v5111_v9 }
 0xf66   :  { %4437 = vmatprep.subr.bf16.mxu1 %v5121_v12 }
 0xf69   :  { %4439 = vmatpush3.bf16.msra.mxu1 %v5121_v12 }
 0xf6a   :  { %4289 = vmatprep.subr.mxu1 %v4697_v62 }
0x102b   :  { %v4248_v15 = vpop.f32.mrb[22].mxu0 }
0x102c   :  { %v1896_v16 = vadd.f32 %v4248_v15, %v5128_v14  ;;  %v1890_v17 = vpop.f32.mrb[23].mxu0 }
0x102d   :  { %v1891_v18 = vadd.f32 %v1890_v17, %v5128_v14 }
0x102e   :  { %v1902_v19 = vmul.f32 0.70710677, %v1896_v16 }
0x102f   :  { %v1901_v20 = vmul.f32 0.70710677, %v1891_v18 }
0x1030   :  { %v1908_v22 = vand.u32 2147483647, %v1902_v19  ;;  %vm1904_vm15 = vcmp.ge.f32.partialorder %v1902_v19, 0.0  ;;  %v63_v19 = vld [vmem:[#allocation5 + $0x8] sm:$0x7] }
0x1031   :  { %v1907_v24 = vand.u32 2147483647, %v1901_v20  ;;  %vm1903_vm0 = vcmp.ge.f32.partialorder %v1901_v20, 0.0  ;;  %v1906_v15 = vsel %vm1904_vm15, 1.0, %v4712_v13  ;;  %v5140_v20 = vrot.slane %v63_v19, %v87_v5 }
0x1032   :  { %v1910_v2 = vmul.f32 0.3275911, %v1908_v22  ;;  %v1936_v30 = vsub.f32 0.0, %v1908_v22 }
0x1033   :  { %v1909_v21 = vmul.f32 0.3275911, %v1907_v24  ;;  %v1935_v31 = vsub.f32 0.0, %v1907_v24 }
0x1034   :  { %v1912_v26 = vadd.f32 1.0, %v1910_v2  ;;  %v1938_v32 = vmul.f32 %v1936_v30, %v1908_v22  ;;  %v1900_v30 = vmul.f32 0.5, %v1896_v16 }
0x1035   :  { %v1911_v28 = vadd.f32 1.0, %v1909_v21  ;;  %v1937_v7 = vmul.f32 %v1935_v31, %v1907_v24  ;;  %v1905_v24 = vsel %vm1903_vm0, 1.0, %v4712_v13 }
0x1036   :  { %4549 = vrcp.f32 %v1912_v26  ;;  %v1941_v38 = vmul.f32 1.442695, %v1938_v32  ;;  %v1899_v26 = vmul.f32 0.5, %v1891_v18 }
0x1037   :  { %4551 = vrcp.f32 %v1911_v28  ;;  %v1939_v43 = vmul.f32 1.442695, %v1937_v7 }
0x1038   :  { %4553 = vpow2.f32 %v1941_v38 }
0x1039   :  { %4555 = vpow2.f32 %v1939_v43 }
0x1040   :  { %v4550_v6 = vpop.eup %4549 }
0x1041   :  { %v4552_v33 = vpop.eup %4551  ;;  %v1918_v34 = vmul.f32 1.0614054, %v4550_v6 }
0x1042   :  { %v1917_v35 = vmul.f32 1.0614054, %v4552_v33  ;;  %v4554_v27 = vpop.eup %4553 }
0x1043   :  { %v1920_v37 = vadd.f32 -1.4531521, %v1918_v34  ;;  %v4556_v8 = vpop.eup %4555 }
0x1044   :  { %v1919_v40 = vadd.f32 -1.4531521, %v1917_v35 }
0x1045   :  { %v1922_v41 = vmul.f32 %v4550_v6, %v1920_v37 }
0x1046   :  { %v1921_v45 = vmul.f32 %v4552_v33, %v1919_v40 }
0x1047   :  { %v1924_v48 = vadd.f32 1.4214138, %v1922_v41 }
0x1048   :  { %v1923_v49 = vadd.f32 1.4214138, %v1921_v45 }
0x1049   :  { %v1926_v50 = vmul.f32 %v4550_v6, %v1924_v48 }
0x104a   :  { %v1925_v52 = vmul.f32 %v4552_v33, %v1923_v49 }
0x104b   :  { %v1928_v53 = vadd.f32 -0.28449672, %v1926_v50 }
0x104c   :  { %v1927_v55 = vadd.f32 -0.28449672, %v1925_v52 }
0x104d   :  { %v1930_v56 = vmul.f32 %v4550_v6, %v1928_v53 }
0x104e   :  { %v1929_v58 = vmul.f32 %v4552_v33, %v1927_v55 }
0x104f   :  { %v1932_v59 = vadd.f32 0.2548296, %v1930_v56 }
0x1050   :  { %v1931_v61 = vadd.f32 0.2548296, %v1929_v58 }
0x1051   :  { %v1934_v63 = vmul.f32 %v4550_v6, %v1932_v59 }
0x1052   :  { %v1933_v29 = vmul.f32 %v4552_v33, %v1931_v61 }
0x1053   :  { %v1944_v44 = vmul.f32 %v4554_v27, %v1934_v63 }
0x1054   :  { %v1943_v10 = vmul.f32 %v4556_v8, %v1933_v29 }
0x1055   :  { %v1946_v11 = vsub.f32 1.0, %v1944_v44 }
0x1056   :  { %v1945_v17 = vsub.f32 1.0, %v1943_v10 }
0x1057   :  { %v1948_v22 = vmul.f32 %v1946_v11, %v1906_v15 }
0x1058   :  { %v1947_v2 = vmul.f32 %v1945_v17, %v1905_v24  ;;  %v5152_v17 = vrot.slane %v63_v19, %v219_v46 }
0x1059   :  { %v1950_v21 = vadd.f32 1.0, %v1948_v22 }
0x105a   :  { %v1949_v28 = vadd.f32 1.0, %v1947_v2 }
0x105b   :  { %v1952_v6 = vmul.f32 %v1950_v21, %v1900_v30  ;;  %v5156_v21 = vrot.slane %v63_v19, %v225_v47 }
0x105c   :  { %v1951_v31 = vmul.f32 %v1949_v28, %v1899_v26 }
0x105e   :  { %4265 = vmatprep.mubr.msk.f32.mxu1 %vm1957_vm1, %v1951_v31 }
0x105f   :  { %4266 = vmatmul.mubr.msk.f32.vlgmr.msra.gmra.mrb[16].mxu1 %vm1957_vm1, %v1952_v6 }
0x1060   :  { %4291 = vmatprep.mubr.msk.f32.mxu1 %vm4698_vm7, %v4697_v62 }
0x1132   :  { %v4267_v32 = vpop.f32.mrb[16].mxu1 }
0x1133   :  { %v2036_v18 = vadd.f32 %v4267_v32, %v5140_v20  ;;  %v2030_v33 = vpop.f32.mrb[17].mxu1 }
0x1134   :  { %v2031_v16 = vadd.f32 %v2030_v33, %v5140_v20 }
0x1135   :  { %v2040_v34 = vadd.f32 %v2036_v18, %v5077_v42 }
0x1136   :  { %v2039_v7 = vadd.f32 %v2031_v16, %v5071_v57 }
0x1137   :  { %v2044_v35 = vsel %vm175_vm2, %v2040_v34, 0.0 }
0x1138   :  { %2045 = vadd.xlane.f32.xlu1 %v2044_v35  ;;  %v2041_v37 = vsel %vm175_vm2, %v2039_v7, 0.0 }
0x1139   :  { %2042 = vadd.xlane.f32.xlu0 %v2041_v37 }
0x11c5   :  { %v2046_v38 = vpop.xlane.xlu1 %2045 }
0x11c6   :  { %v2048_v40 = vmul.f32 0.03125, %v2046_v38  ;;  %v2043_v5 = vpop.xlane.xlu0 %2042 }
0x11c7   :  { %v2047_v41 = vmul.f32 0.03125, %v2043_v5 }
0x11c8   :  { %v2050_v43 = vsub.f32 %v2040_v34, %v2048_v40 }
0x11c9   :  { %v2049_v45 = vsub.f32 %v2039_v7, %v2047_v41 }
0x11ca   :  { %v2052_v48 = vmul.f32 %v2050_v43, %v2050_v43 }
0x11cb   :  { %v2051_v49 = vmul.f32 %v2049_v45, %v2049_v45 }
0x11cc   :  { %v2056_v50 = vsel %vm175_vm2, %v2052_v48, 0.0 }
0x11cd   :  { %2057 = vadd.xlane.f32.xlu1 %v2056_v50  ;;  %v2053_v42 = vsel %vm175_vm2, %v2051_v49, 0.0 }
0x11ce   :  { %2054 = vadd.xlane.f32.xlu0 %v2053_v42 }
0x125a   :  { %v2058_v57 = vpop.xlane.xlu1 %2057 }
0x125b   :  { %v2060_v52 = vmul.f32 0.03125, %v2058_v57  ;;  %v2055_v53 = vpop.xlane.xlu0 %2054 }
0x125c   :  { %v2059_v55 = vmul.f32 0.03125, %v2055_v53 }
0x125d   :  { %v2062_v56 = vadd.f32 1e-12, %v2060_v52 }
0x125e   :  { %v2061_v58 = vadd.f32 1e-12, %v2059_v55 }
0x125f   :  { %4557 = vrsqrt.f32 %v2062_v56  ;;  %vm2072_vm3 = vcmp.eq.f32.partialorder %v2062_v56, inf  ;;  %v2075_v27 = vand.u32 2147483648, %v2062_v56  ;;  %vm2074_vm4 = vcmp.eq.f32.partialorder %v2062_v56, 0.0 }
0x1260   :  { %4559 = vrsqrt.f32 %v2061_v58  ;;  %vm2065_vm5 = vcmp.eq.f32.partialorder %v2061_v58, inf  ;;  %v2068_v44 = vand.u32 2147483648, %v2061_v58  ;;  %vm2067_vm6 = vcmp.eq.f32.partialorder %v2061_v58, 0.0 }
0x1269   :  { %v4558_v59 = vpop.eup %4557 }
0x126a   :  { %v4560_v61 = vpop.eup %4559  ;;  %v2071_v63 = vmul.f32 %v4558_v59, %v2062_v56 }
0x126b   :  { %v2064_v29 = vmul.f32 %v4560_v61, %v2061_v58 }
0x126c   :  { %v2073_v8 = vsel %vm2072_vm3, %v2062_v56, %v2071_v63 }
0x126d   :  { %v2076_v10 = vsel %vm2074_vm4, %v2075_v27, %v2073_v8  ;;  %v2066_v11 = vsel %vm2065_vm5, %v2061_v58, %v2064_v29 }
0x126e   :  { %4561 = vrcp.f32 %v2076_v10  ;;  %v2069_v15 = vsel %vm2067_vm6, %v2068_v44, %v2066_v11 }
0x126f   :  { %4563 = vrcp.f32 %v2069_v15 }
0x1278   :  { %v4562_v22 = vpop.eup %4561 }
0x1279   :  { %v4564_v24 = vpop.eup %4563  ;;  %v2080_v2 = vmul.f32 %v4562_v22, %v2050_v43 }
0x127a   :  { %v2078_v26 = vmul.f32 %v4564_v24, %v2049_v45 }
0x127b   :  { %v2086_v28 = vmul.f32 %v5152_v17, %v2080_v2 }
0x127c   :  { %v2085_v30 = vmul.f32 %v5152_v17, %v2078_v26 }
0x127d   :  { %v2092_v6 = vadd.f32 %v5156_v21, %v2086_v28 }
0x127e   :  { %v2091_v31 = vadd.f32 %v5156_v21, %v2085_v30 }
0x1280   :  { %4276 = vmatprep.mubr.msk.f32.mxu0 %vm175_vm2, %v2091_v31 }
0x1281   :  { %4277 = vmatmul.mubr.msk.f32.vlgmr.msra.gmra.mrb[24].mxu0 %vm175_vm2, %v2092_v6 }
0x1282   :  { %4281 = vmatprep.mubr.msk.f32.mxu0 %vm4698_vm7, %v4697_v62 }
0x1354   :  { %v4278_v46 = vpop.f32.mrb[24].mxu0 }
0x1355   :  { %v5167_v4 = vadd.f32 %v4278_v46, %v4848_v0  ;;  %v2165_v47 = vpop.f32.mrb[25].mxu0 }
0x1356   :  { %v5170_v19 = vadd.f32 %v2165_v47, %v4848_v0 }
0x1357   :  { %2252 = vrot.lane.b32.xlu1 %v5167_v4, %s4699_s4 }
0x1358   :  { %2175 = vrot.lane.b32.xlu0 %v5170_v19, %s4699_s4  ;;  %s3928_s4 = sshll.u32 %s4713_s7, 4  ;;  %s3929_s4 = int_to_ptr.vmem [resolvable:$true] %s3928_s4 }
0x1359   :  { %p4670_p3 = scmp.lt.s32.totalorder %s3929_s4, %s3929_s4 }
0x13c9   :  { %v2253_v18 = vpop.permute.xlu1 %2252 }
0x13ca   :  { %v2176_v32 = vpop.permute.xlu0 %2175 }
0x13cb   :  { %4280 = vmatpush3.xpose.msk.msra.mxu0 %vm319_vm8, %v2176_v32 }
0x13cc   :  { %4284 = vmatprep.subr.mxu0 %v4697_v62 }
0x13ce   :  { %4282 = vmatmul.mubr.msk.f32.vlgmr.msra.gmra.mrb[26].mxu0 %vm319_vm8, %v5170_v19 }
0x13cf   :  { %4285 = vmatpush3.xpose.msk.msra.mxu0 %vm319_vm8, %v2253_v18  ;;  %4286 = vmatprep.mubr.msk.f32.mxu0 %vm4698_vm7, %v4697_v62 }
0x13d0   :  { %4294 = vmatprep.subr.mxu0 %v4697_v62 }
0x13d2   :  { %4287 = vmatmul.mubr.msk.f32.vlgmr.msra.gmra.mrb[28].mxu0 %vm319_vm8, %v5167_v4 }
0x13d3   :  { %4296 = vmatprep.mubr.msk.f32.mxu0 %vm4698_vm7, %v4697_v62 }
0x14a1   :  { %v2247_v0 = vpop.f32.mrb[26].mxu0 }
0x14a2   :  { %v2328_v33 = vmul.f32 0.35355338, %v2247_v0  ;;  %v4283_v16 = vpop.f32.mrb[27].mxu0 }
0x14a4   :  { %v2330_v34 = vsel %vm319_vm8, %v2328_v33, -inf }
0x14a5   :  { %2331 = vmax.xlane.f32.xlu1 %v2330_v34  ;;  %v2324_v7 = vpop.f32.mrb[28].mxu0 }
0x14a6   :  { %v2329_v35 = vmul.f32 0.35355338, %v2324_v7  ;;  %v4288_v37 = vpop.f32.mrb[29].mxu0 }
0x14a8   :  { %v2333_v38 = vsel %vm319_vm8, %v2329_v35, -inf }
0x14a9   :  { %2334 = vmax.xlane.f32.xlu0 %v2333_v38 }
0x14b6   :  { %2428 = vrot.lane.b32.xlu1 %v5167_v4, %s4700_s21 }
0x14ba   :  { %2506 = vrot.lane.b32.xlu1 %v5170_v19, %s4701_s22 }
0x14be   :  { %2584 = vrot.lane.b32.xlu1 %v5167_v4, %s4701_s22 }
0x14bf   :  { %2352 = vrot.lane.b32.xlu0 %v5170_v19, %s4700_s21  ;;  %s4665_s21 = scalar_lea.vmem %s3929_s4, 256 }
0x14c0   :  { %p4666_p2 = scmp.ne.s32.totalorder %s3929_s4, %s4665_s21  ;;  %p4671_p4 = scmp.lt.s32.totalorder %s4665_s21, %s4665_s21 }
0x14c2   :  { %p4672_p5 = por %p4671_p4, %p4670_p3 }
0x14c4   :  { %p4673_p6 = pnand %p4672_p5, %p4666_p2 }
0x1532   :  { %v2332_v40 = vpop.xlane.xlu1 %2331 }
0x1533   :  { %v2336_v5 = vsub.f32 %v2328_v33, %v2332_v40 }
0x1535   :  { %v2338_v41 = vmul.f32 1.442695, %v2336_v5 }
0x1536   :  { %v2429_v43 = vpop.permute.xlu1 %2428  ;;  %v2335_v45 = vpop.xlane.xlu0 %2334 }
0x1537   :  { %4565 = vpow2.f32 %v2338_v41  ;;  %v2337_v48 = vsub.f32 %v2329_v35, %v2335_v45  ;;  %4295 = vmatpush3.msra.mxu0 %v2429_v43 }
0x1538   :  { %4304 = vmatprep.subr.mxu0 %v4697_v62 }
0x1539   :  { %v2340_v49 = vmul.f32 1.442695, %v2337_v48 }
0x153a   :  { %v2353_v50 = vpop.permute.xlu0 %2352  ;;  %v2507_v55 = vpop.permute.xlu1 %2506 }
0x153b   :  { %4567 = vpow2.f32 %v2340_v49  ;;  %4290 = vmatpush3.msra.mxu1 %v2353_v50 }
0x153c   :  { %4299 = vmatprep.subr.mxu1 %v4697_v62 }
0x153e   :  { %v2585_v56 = vpop.permute.xlu1 %2584 }
0x1541   :  { %v4566_v42 = vpop.eup %4565 }
0x1542   :  { %v2342_v57 = vsel %vm319_vm8, %v4566_v42, 0.0 }
0x1543   :  { %2343 = vadd.xlane.f32.xlu0 %v2342_v57 }
0x1545   :  { %v4568_v52 = vpop.eup %4567 }
0x1546   :  { %v2345_v53 = vsel %vm319_vm8, %v4568_v52, 0.0 }
0x1547   :  { %2346 = vadd.xlane.f32.xlu1 %v2345_v53 }
0x1558   :  { %2582 = vrot.lane.b32.xlu1 %v5167_v4, %s4702_s23 }
0x1559   :  { %2504 = vrot.lane.b32.xlu0 %v5170_v19, %s4702_s23 }
0x15d0   :  { %v2344_v58 = vpop.xlane.xlu0 %2343 }
0x15d1   :  { %4569 = vrcp.f32 %v2344_v58 }
0x15d4   :  { %v2347_v59 = vpop.xlane.xlu1 %2346  ;;  %v2505_v8 = vpop.permute.xlu0 %2504 }
0x15d5   :  { %4571 = vrcp.f32 %v2347_v59 }
0x15d8   :  { %v2583_v44 = vpop.permute.xlu1 %2582 }
0x15db   :  { %v4570_v61 = vpop.eup %4569 }
0x15dc   :  { %v2349_v63 = vmul.f32 %v4570_v61, %v4566_v42 }
0x15de   :  { %4292 = vmatmul.mubr.msk.f32.vlgmr.msra.gmra.mrb[18].mxu1 %vm319_vm8, %v2349_v63 }
0x15df   :  { %v4572_v27 = vpop.eup %4571  ;;  %4300 = vmatpush3.xpose.msk.msra.mxu1 %vm319_vm8, %v2507_v55  ;;  %4301 = vmatprep.mubr.msk.f32.mxu1 %vm4698_vm7, %v4697_v62 }
0x15e0   :  { %v2351_v29 = vmul.f32 %v4572_v27, %v4568_v52  ;;  %4309 = vmatprep.subr.mxu1 %v4697_v62 }
0x15e2   :  { %4297 = vmatmul.mubr.msk.f32.vlgmr.msra.gmra.mrb[30].mxu0 %vm319_vm8, %v2351_v29  ;;  %4302 = vmatmul.mubr.msk.f32.vlgmr.msra.gmra.mrb[20].mxu1 %vm319_vm8, %v2505_v8 }
0x15e3   :  { %4305 = vmatpush3.xpose.msk.msra.mxu0 %vm319_vm8, %v2585_v56  ;;  %4306 = vmatprep.mubr.msk.f32.mxu0 %vm4698_vm7, %v4697_v62 }
0x15e4   :  { %4314 = vmatprep.subr.mxu0 %v4697_v62  ;;  %4311 = vmatprep.mubr.msk.f32.mxu1 %vm4698_vm7, %v4697_v62 }
0x15e6   :  { %4307 = vmatmul.mubr.msk.f32.vlgmr.msra.gmra.mrb[32].mxu0 %vm319_vm8, %v2583_v44 }
0x15e7   :  { %4316 = vmatprep.mubr.msk.f32.mxu0 %vm4698_vm7, %v4697_v62 }
0x16b1   :  { %v5222_v10 = vpop.f32.mrb[18].mxu1 }
0x16b2   :  { %v4293_v11 = vpop.f32.mrb[19].mxu1 }
0x16b5   :  { %v5224_v15 = vpop.f32.mrb[30].mxu0  ;;  %v2578_v22 = vpop.f32.mrb[20].mxu1 }
0x16b6   :  { %v2660_v24 = vmul.f32 0.35355338, %v2578_v22  ;;  %v4298_v2 = vpop.f32.mrb[31].mxu0  ;;  %v4303_v26 = vpop.f32.mrb[21].mxu1 }
0x16b8   :  { %v2662_v28 = vsel %vm319_vm8, %v2660_v24, -inf }
0x16b9   :  { %2663 = vmax.xlane.f32.xlu0 %v2662_v28  ;;  %v2656_v30 = vpop.f32.mrb[32].mxu0 }
0x16ba   :  { %v2661_v31 = vmul.f32 0.35355338, %v2656_v30  ;;  %v4308_v6 = vpop.f32.mrb[33].mxu0 }
0x16bc   :  { %v2665_v46 = vsel %vm319_vm8, %v2661_v31, -inf }
0x16bd   :  { %2666 = vmax.xlane.f32.xlu1 %v2665_v46 }
0x16ce   :  { %2760 = vrot.lane.b32.xlu1 %v5167_v4, %s4703_s24 }
0x16cf   :  { %2684 = vrot.lane.b32.xlu0 %v5170_v19, %s4703_s24 }
0x16d2   :  { %2838 = vrot.lane.b32.xlu1 %v5170_v19, %s4704_s25 }
0x16d6   :  { %2916 = vrot.lane.b32.xlu1 %v5167_v4, %s4704_s25 }
0x16da   :  { %2914 = vrot.lane.b32.xlu1 %v5167_v4, %s4705_s26 }
0x1746   :  { %v2664_v47 = vpop.xlane.xlu0 %2663 }
0x1747   :  { %v2668_v32 = vsub.f32 %v2660_v24, %v2664_v47 }
0x1749   :  { %v2670_v18 = vmul.f32 1.442695, %v2668_v32 }
0x174a   :  { %v2685_v0 = vpop.permute.xlu0 %2684  ;;  %v2667_v33 = vpop.xlane.xlu1 %2666 }
0x174b   :  { %4573 = vpow2.f32 %v2670_v18  ;;  %v2669_v16 = vsub.f32 %v2661_v31, %v2667_v33  ;;  %4310 = vmatpush3.msra.mxu1 %v2685_v0 }
0x174c   :  { %4319 = vmatprep.subr.mxu1 %v4697_v62 }
0x174d   :  { %v2672_v34 = vmul.f32 1.442695, %v2669_v16 }
0x174e   :  { %v2761_v7 = vpop.permute.xlu1 %2760 }
0x174f   :  { %4575 = vpow2.f32 %v2672_v34  ;;  %4315 = vmatpush3.msra.mxu0 %v2761_v7 }
0x1750   :  { %4324 = vmatprep.subr.mxu0 %v4697_v62 }
0x1752   :  { %v2839_v43 = vpop.permute.xlu1 %2838 }
0x1755   :  { %v4574_v35 = vpop.eup %4573 }
0x1756   :  { %v2674_v37 = vsel %vm319_vm8, %v4574_v35, 0.0  ;;  %v2917_v50 = vpop.permute.xlu1 %2916 }
0x1757   :  { %2675 = vadd.xlane.f32.xlu0 %v2674_v37 }
0x1759   :  { %v4576_v38 = vpop.eup %4575 }
0x175a   :  { %v2677_v40 = vsel %vm319_vm8, %v4576_v38, 0.0  ;;  %v2915_v52 = vpop.permute.xlu1 %2914 }
0x175b   :  { %2678 = vadd.xlane.f32.xlu0 %v2677_v40 }
0x1771   :  { %2836 = vrot.lane.b32.xlu0 %v5170_v19, %s4705_s26 }
0x17e4   :  { %v2676_v5 = vpop.xlane.xlu0 %2675 }
0x17e5   :  { %4577 = vrcp.f32 %v2676_v5 }
0x17e8   :  { %v2679_v41 = vpop.xlane.xlu0 %2678 }
0x17e9   :  { %4579 = vrcp.f32 %v2679_v41 }
0x17ec   :  { %v2837_v57 = vpop.permute.xlu0 %2836 }
0x17ef   :  { %v4578_v45 = vpop.eup %4577 }
0x17f0   :  { %v2681_v48 = vmul.f32 %v4578_v45, %v4574_v35 }
0x17f2   :  { %4312 = vmatmul.mubr.msk.f32.vlgmr.msra.gmra.mrb[22].mxu1 %vm319_vm8, %v2681_v48 }
0x17f3   :  { %v4580_v49 = vpop.eup %4579  ;;  %4320 = vmatpush3.xpose.msk.msra.mxu1 %vm319_vm8, %v2839_v43  ;;  %4321 = vmatprep.mubr.msk.f32.mxu1 %vm4698_vm7, %v4697_v62 }
0x17f4   :  { %v2683_v42 = vmul.f32 %v4580_v49, %v4576_v38  ;;  %4329 = vmatprep.subr.mxu1 %v4697_v62 }
0x17f6   :  { %4317 = vmatmul.mubr.msk.f32.vlgmr.msra.gmra.mrb[34].mxu0 %vm319_vm8, %v2683_v42  ;;  %4322 = vmatmul.mubr.msk.f32.vlgmr.msra.gmra.mrb[24].mxu1 %vm319_vm8, %v2837_v57 }
0x17f7   :  { %4325 = vmatpush3.xpose.msk.msra.mxu0 %vm319_vm8, %v2917_v50  ;;  %4326 = vmatprep.mubr.msk.f32.mxu0 %vm4698_vm7, %v4697_v62 }
0x17f8   :  { %4334 = vmatprep.subr.mxu0 %v4697_v62  ;;  %4331 = vmatprep.mubr.msk.f32.mxu1 %vm4698_vm7, %v4697_v62 }
0x17fa   :  { %4327 = vmatmul.mubr.msk.f32.vlgmr.msra.gmra.mrb[36].mxu0 %vm319_vm8, %v2915_v52 }
0x17fb   :  { %4336 = vmatprep.mubr.msk.f32.mxu0 %vm4698_vm7, %v4697_v62 }
0x18c5   :  { %v5260_v53 = vpop.f32.mrb[22].mxu1 }
0x18c6   :  { %v4313_v55 = vpop.f32.mrb[23].mxu1 }
0x18c9   :  { %v5262_v56 = vpop.f32.mrb[34].mxu0  ;;  %v2910_v58 = vpop.f32.mrb[24].mxu1 }
0x18ca   :  { %v2992_v59 = vmul.f32 0.35355338, %v2910_v58  ;;  %v4318_v61 = vpop.f32.mrb[35].mxu0  ;;  %v4323_v63 = vpop.f32.mrb[25].mxu1 }
0x18cc   :  { %v2994_v27 = vsel %vm319_vm8, %v2992_v59, -inf }
0x18cd   :  { %2995 = vmax.xlane.f32.xlu0 %v2994_v27  ;;  %v2988_v29 = vpop.f32.mrb[36].mxu0 }
0x18ce   :  { %v2993_v8 = vmul.f32 0.35355338, %v2988_v29  ;;  %v4328_v44 = vpop.f32.mrb[37].mxu0 }
0x18d0   :  { %v2997_v11 = vsel %vm319_vm8, %v2993_v8, -inf }
0x18d1   :  { %2998 = vmax.xlane.f32.xlu1 %v2997_v11 }
0x18e2   :  { %3092 = vrot.lane.b32.xlu1 %v5167_v4, %s4706_s27 }
0x18e3   :  { %3016 = vrot.lane.b32.xlu0 %v5170_v19, %s4706_s27 }
0x18e6   :  { %3170 = vrot.lane.b32.xlu1 %v5170_v19, %s4707_s29 }
0x18ea   :  { %3248 = vrot.lane.b32.xlu1 %v5167_v4, %s4707_s29 }
0x18ee   :  { %3246 = vrot.lane.b32.xlu1 %v5167_v4, %s4708_s1 }
0x195a   :  { %v2996_v22 = vpop.xlane.xlu0 %2995 }
0x195b   :  { %v3000_v24 = vsub.f32 %v2992_v59, %v2996_v22 }
0x195d   :  { %v3002_v2 = vmul.f32 1.442695, %v3000_v24 }
0x195e   :  { %v3017_v26 = vpop.permute.xlu0 %3016  ;;  %v2999_v28 = vpop.xlane.xlu1 %2998 }
0x195f   :  { %4581 = vpow2.f32 %v3002_v2  ;;  %v3001_v30 = vsub.f32 %v2993_v8, %v2999_v28  ;;  %4330 = vmatpush3.msra.mxu1 %v3017_v26 }
0x1960   :  { %4339 = vmatprep.subr.mxu1 %v4697_v62 }
0x1961   :  { %v3004_v31 = vmul.f32 1.442695, %v3001_v30 }
0x1962   :  { %v3093_v6 = vpop.permute.xlu1 %3092 }
0x1963   :  { %4583 = vpow2.f32 %v3004_v31  ;;  %4335 = vmatpush3.msra.mxu0 %v3093_v6 }
0x1964   :  { %4344 = vmatprep.subr.mxu0 %v4697_v62 }
0x1966   :  { %v3171_v16 = vpop.permute.xlu1 %3170 }
0x1969   :  { %v4582_v46 = vpop.eup %4581 }
0x196a   :  { %v3006_v47 = vsel %vm319_vm8, %v4582_v46, 0.0  ;;  %v3249_v37 = vpop.permute.xlu1 %3248 }
0x196b   :  { %3007 = vadd.xlane.f32.xlu0 %v3006_v47 }
0x196d   :  { %v4584_v32 = vpop.eup %4583 }
0x196e   :  { %v3009_v18 = vsel %vm319_vm8, %v4584_v32, 0.0  ;;  %v3247_v5 = vpop.permute.xlu1 %3246 }
0x196f   :  { %3010 = vadd.xlane.f32.xlu0 %v3009_v18 }
0x1985   :  { %3168 = vrot.lane.b32.xlu0 %v5170_v19, %s4708_s1 }
0x19f8   :  { %v3008_v0 = vpop.xlane.xlu0 %3007 }
0x19f9   :  { %4585 = vrcp.f32 %v3008_v0 }
0x19fc   :  { %v3011_v33 = vpop.xlane.xlu0 %3010 }
0x19fd   :  { %4587 = vrcp.f32 %v3011_v33 }
0x1a00   :  { %v3169_v40 = vpop.permute.xlu0 %3168 }
0x1a03   :  { %v4586_v34 = vpop.eup %4585 }
0x1a04   :  { %v3013_v7 = vmul.f32 %v4586_v34, %v4582_v46 }
0x1a06   :  { %4332 = vmatmul.mubr.msk.f32.vlgmr.msra.gmra.mrb[26].mxu1 %vm319_vm8, %v3013_v7 }
0x1a07   :  { %v4588_v35 = vpop.eup %4587  ;;  %4340 = vmatpush3.xpose.msk.msra.mxu1 %vm319_vm8, %v3171_v16  ;;  %4341 = vmatprep.mubr.msk.f32.mxu1 %vm4698_vm7, %v4697_v62 }
0x1a08   :  { %v3015_v38 = vmul.f32 %v4588_v35, %v4584_v32  ;;  %4349 = vmatprep.subr.mxu1 %v4697_v62 }
0x1a0a   :  { %4337 = vmatmul.mubr.msk.f32.vlgmr.msra.gmra.mrb[38].mxu0 %vm319_vm8, %v3015_v38  ;;  %4342 = vmatmul.mubr.msk.f32.vlgmr.msra.gmra.mrb[28].mxu1 %vm319_vm8, %v3169_v40 }
0x1a0b   :  { %4345 = vmatpush3.xpose.msk.msra.mxu0 %vm319_vm8, %v3249_v37  ;;  %4346 = vmatprep.mubr.msk.f32.mxu0 %vm4698_vm7, %v4697_v62 }
0x1a0c   :  { %4354 = vmatprep.subr.mxu0 %v4697_v62  ;;  %4351 = vmatprep.mubr.msk.f32.mxu1 %vm4698_vm7, %v4697_v62 }
0x1a0e   :  { %4347 = vmatmul.mubr.msk.f32.vlgmr.msra.gmra.mrb[40].mxu0 %vm319_vm8, %v3247_v5 }
0x1a0f   :  { %4356 = vmatprep.mubr.msk.f32.mxu0 %vm4698_vm7, %v4697_v62 }
0x1ad9   :  { %v3088_v41 = vpop.f32.mrb[26].mxu1 }
0x1ada   :  { %v4333_v43 = vpop.f32.mrb[27].mxu1 }
0x1add   :  { %v3164_v45 = vpop.f32.mrb[38].mxu0  ;;  %v3242_v48 = vpop.f32.mrb[28].mxu1 }
0x1ade   :  { %v3324_v49 = vmul.f32 0.35355338, %v3242_v48  ;;  %v4338_v50 = vpop.f32.mrb[39].mxu0  ;;  %v4343_v42 = vpop.f32.mrb[29].mxu1 }
0x1ae0   :  { %v3326_v57 = vsel %vm319_vm8, %v3324_v49, -inf }
0x1ae1   :  { %3327 = vmax.xlane.f32.xlu0 %v3326_v57  ;;  %v3320_v52 = vpop.f32.mrb[40].mxu0 }
0x1ae2   :  { %v3325_v55 = vmul.f32 0.35355338, %v3320_v52  ;;  %v4348_v58 = vpop.f32.mrb[41].mxu0 }
0x1ae4   :  { %v3329_v59 = vsel %vm319_vm8, %v3325_v55, -inf }
0x1ae5   :  { %3330 = vmax.xlane.f32.xlu1 %v3329_v59 }
0x1af6   :  { %3424 = vrot.lane.b32.xlu1 %v5167_v4, %s4709_s28 }
0x1afa   :  { %3502 = vrot.lane.b32.xlu1 %v5260_v53, %s4695_s16 }
0x1afe   :  { %3504 = vrot.lane.b32.xlu1 %v5262_v56, %s4695_s16 }
0x1b02   :  { %3512 = vrot.lane.b32.xlu1 %v3164_v45, %s4710_s30 }
0x1b6e   :  { %v3328_v62 = vpop.xlane.xlu0 %3327 }
0x1b6f   :  { %v3332_v61 = vsub.f32 %v3324_v49, %v3328_v62 }
0x1b71   :  { %v3334_v63 = vmul.f32 1.442695, %v3332_v61 }
0x1b72   :  { %v3331_v27 = vpop.xlane.xlu1 %3330 }
0x1b73   :  { %4589 = vpow2.f32 %v3334_v63  ;;  %v3333_v29 = vsub.f32 %v3325_v55, %v3331_v27 }
0x1b75   :  { %v3336_v8 = vmul.f32 1.442695, %v3333_v29 }
0x1b76   :  { %v3425_v44 = vpop.permute.xlu1 %3424 }
0x1b77   :  { %4591 = vpow2.f32 %v3336_v8  ;;  %4355 = vmatpush3.msra.mxu0 %v3425_v44 }
0x1b78   :  { %4457 = vmatprep.subr.bf16.mxu0 %v5049_v25 }
0x1b7a   :  { %v3503_v47 = vpop.permute.xlu1 %3502 }
0x1b7d   :  { %v4590_v4 = vpop.eup %4589 }
0x1b7e   :  { %v3338_v53 = vsel %vm319_vm8, %v4590_v4, 0.0  ;;  %v3505_v32 = vpop.permute.xlu1 %3504 }
0x1b7f   :  { %3339 = vadd.xlane.f32.xlu0 %v3338_v53  ;;  %v3525_v16 = vsel %vm319_vm8, %v5224_v15, %v3505_v32 }
0x1b81   :  { %v4592_v11 = vpop.eup %4591 }
0x1b82   :  { %v3341_v56 = vsel %vm319_vm8, %v4592_v11, 0.0 }
0x1b83   :  { %3342 = vadd.xlane.f32.xlu0 %v3341_v56 }
0x1b99   :  { %3348 = vrot.lane.b32.xlu0 %v5170_v19, %s4709_s28 }
0x1b9d   :  { %3510 = vrot.lane.b32.xlu0 %v3088_v41, %s4710_s30 }
0x1c0c   :  { %v3340_v22 = vpop.xlane.xlu0 %3339 }
0x1c0d   :  { %4593 = vrcp.f32 %v3340_v22 }
0x1c10   :  { %v3343_v24 = vpop.xlane.xlu0 %3342 }
0x1c11   :  { %4595 = vrcp.f32 %v3343_v24 }
0x1c14   :  { %v3349_v2 = vpop.permute.xlu0 %3348 }
0x1c15   :  { %4350 = vmatpush3.msra.mxu1 %v3349_v2 }
0x1c16   :  { %4449 = vmatprep.subr.bf16.mxu1 %v5004_v36 }
0x1c17   :  { %v4594_v26 = vpop.eup %4593 }
0x1c18   :  { %v3345_v28 = vmul.f32 %v4594_v26, %v4590_v4  ;;  %v3511_v18 = vpop.permute.xlu0 %3510 }
0x1c1a   :  { %4352 = vmatmul.mubr.msk.f32.vlgmr.msra.gmra.mrb[30].mxu1 %vm319_vm8, %v3345_v28 }
0x1c1b   :  { %v4596_v30 = vpop.eup %4595  ;;  %4451 = vmatpush3.bf16.msra.mxu1 %v5004_v36 }
0x1c1c   :  { %v3347_v31 = vmul.f32 %v4596_v30, %v4592_v11  ;;  %4453 = vmatprep.subr.bf16.mxu1 %v5014_v39 }
0x1c1e   :  { %4357 = vmatmul.mubr.msk.f32.vlgmr.msra.gmra.mrb[42].mxu0 %vm319_vm8, %v3347_v31 }
0x1c1f   :  { %4455 = vmatpush3.bf16.msra.mxu1 %v5014_v39  ;;  %4459 = vmatpush3.bf16.msra.mxu0 %v5049_v25  ;;  %v3524_v39 = vsel %vm319_vm8, %v5222_v10, %v3503_v47  ;;  %v3513_v25 = vpop.permute.xlu1 %3512 }
0x1c20   :  { %4461 = vmatprep.subr.bf16.mxu0 %v5054_v23  ;;  %4465 = vmatprep.subr.bf16.mxu1 %v5091_v1  ;;  %v3526_v0 = vsel %vm1669_vm10, %v3524_v39, %v3511_v18  ;;  %v3527_v34 = vsel %vm1669_vm10, %v3525_v16, %v3513_v25 }
0x1c23   :  { %4463 = vmatpush3.bf16.msra.mxu0 %v5054_v23 }
0x1ced   :  { %v3420_v19 = vpop.f32.mrb[30].mxu1 }
0x1cee   :  { %3518 = vrot.lane.b32.xlu0 %v3420_v19, %s4711_s14  ;;  %v4353_v6 = vpop.f32.mrb[31].mxu1 }
0x1cf1   :  { %v3496_v36 = vpop.f32.mrb[42].mxu0 }
0x1cf2   :  { %3520 = vrot.lane.b32.xlu1 %v3496_v36, %s4711_s14  ;;  %v4358_v46 = vpop.f32.mrb[43].mxu0 }
0x1d60   :  { %v3519_v33 = vpop.permute.xlu0 %3518 }
0x1d61   :  { %v3528_v23 = vsel %vm1672_vm9, %v3526_v0, %v3519_v33 }
0x1d62   :  { %4367 = vmatprep.mubr.msk.f32.mxu1 %vm175_vm2, %v3528_v23 }
0x1d64   :  { %v3521_v7 = vpop.permute.xlu1 %3520 }
0x1d65   :  { %v3529_v35 = vsel %vm1672_vm9, %v3527_v34, %v3521_v7 }
0x1d66   :  { %4368 = vmatmul.mubr.msk.f32.vlgmr.msra.gmra.mrb[32].mxu1 %vm175_vm2, %v3529_v35 }
0x1d67   :  { %4467 = vmatpush3.bf16.msra.mxu1 %v5091_v1 }
0x1d68   :  { %4469 = vmatprep.subr.bf16.mxu1 %v5101_v3 }
0x1d6b   :  { %4471 = vmatpush3.bf16.msra.mxu1 %v5101_v3 }
0x1d6c   :  { %4473 = vmatprep.subr.bf16.mxu1 %v5111_v9 }
0x1d6f   :  { %4475 = vmatpush3.bf16.msra.mxu1 %v5111_v9 }
0x1d70   :  { %4477 = vmatprep.subr.bf16.mxu1 %v5121_v12 }
0x1d73   :  { %4479 = vmatpush3.bf16.msra.mxu1 %v5121_v12 }
0x1e39   :  { %v4369_v10 = vpop.f32.mrb[32].mxu1 }
0x1e3a   :  { %v3608_v15 = vadd.f32 %v4369_v10, %v5032_v60  ;;  %v3602_v37 = vpop.f32.mrb[33].mxu1 }
0x1e3b   :  { %v3603_v38 = vadd.f32 %v3602_v37, %v5032_v60 }
0x1e3c   :  { %v3612_v40 = vadd.f32 %v3608_v15, %v3529_v35 }
0x1e3d   :  { %v3611_v1 = vadd.f32 %v3603_v38, %v3528_v23 }
0x1e3e   :  { %v3616_v5 = vsel %vm175_vm2, %v3612_v40, 0.0 }
0x1e3f   :  { %3617 = vadd.xlane.f32.xlu1 %v3616_v5  ;;  %v3613_v3 = vsel %vm175_vm2, %v3611_v1, 0.0 }
0x1e40   :  { %3614 = vadd.xlane.f32.xlu0 %v3613_v3 }
0x1ecc   :  { %v3618_v41 = vpop.xlane.xlu1 %3617 }
0x1ecd   :  { %v3620_v9 = vmul.f32 0.03125, %v3618_v41  ;;  %v3615_v43 = vpop.xlane.xlu0 %3614 }
0x1ece   :  { %v3619_v45 = vmul.f32 0.03125, %v3615_v43 }
0x1ecf   :  { %v3622_v48 = vsub.f32 %v3612_v40, %v3620_v9 }
0x1ed0   :  { %v3621_v12 = vsub.f32 %v3611_v1, %v3619_v45 }
0x1ed1   :  { %v3624_v42 = vmul.f32 %v3622_v48, %v3622_v48 }
0x1ed2   :  { %v3623_v49 = vmul.f32 %v3621_v12, %v3621_v12 }
0x1ed3   :  { %v3628_v60 = vsel %vm175_vm2, %v3624_v42, 0.0 }
0x1ed4   :  { %v3625_v50 = vsel %vm175_vm2, %v3623_v49, 0.0 }
0x1ed5   :  { %3626 = vadd.xlane.f32.xlu0 %v3625_v50 }
0x1ed9   :  { %3629 = vadd.xlane.f32.xlu0 %v3628_v60 }
0x1f62   :  { %v3627_v57 = vpop.xlane.xlu0 %3626 }
0x1f63   :  { %v3631_v52 = vmul.f32 0.03125, %v3627_v57 }
0x1f65   :  { %v3633_v55 = vadd.f32 1e-12, %v3631_v52 }
0x1f66   :  { %v3630_v58 = vpop.xlane.xlu0 %3629 }
0x1f67   :  { %4597 = vrsqrt.f32 %v3633_v55  ;;  %v3632_v59 = vmul.f32 0.03125, %v3630_v58  ;;  %vm3637_vm7 = vcmp.eq.f32.partialorder %v3633_v55, inf  ;;  %v3640_v27 = vand.u32 2147483648, %v3633_v55 }
0x1f68   :  { %vm3639_vm8 = vcmp.eq.f32.partialorder %v3633_v55, 0.0 }
0x1f69   :  { %v3634_v62 = vadd.f32 1e-12, %v3632_v59 }
0x1f6b   :  { %4599 = vrsqrt.f32 %v3634_v62  ;;  %vm3644_vm9 = vcmp.eq.f32.partialorder %v3634_v62, inf  ;;  %v3647_v53 = vand.u32 2147483648, %v3634_v62  ;;  %vm3646_vm10 = vcmp.eq.f32.partialorder %v3634_v62, 0.0 }
0x1f71   :  { %v4598_v61 = vpop.eup %4597 }
0x1f72   :  { %v3636_v63 = vmul.f32 %v4598_v61, %v3633_v55 }
0x1f74   :  { %v3638_v29 = vsel %vm3637_vm7, %v3633_v55, %v3636_v63 }
0x1f75   :  { %v3641_v8 = vsel %vm3639_vm8, %v3640_v27, %v3638_v29  ;;  %v4600_v44 = vpop.eup %4599 }
0x1f76   :  { %4601 = vrcp.f32 %v3641_v8  ;;  %v3643_v4 = vmul.f32 %v4600_v44, %v3634_v62 }
0x1f78   :  { %v3645_v11 = vsel %vm3644_vm9, %v3634_v62, %v3643_v4 }
0x1f79   :  { %v3648_v56 = vsel %vm3646_vm10, %v3647_v53, %v3645_v11 }
0x1f7a   :  { %4603 = vrcp.f32 %v3648_v56 }
0x1f80   :  { %v4602_v22 = vpop.eup %4601 }
0x1f81   :  { %v3650_v24 = vmul.f32 %v4602_v22, %v3621_v12 }
0x1f83   :  { %v3653_v2 = vmul.f32 %v3650_v24, %v5064_v51 }
0x1f84   :  { %v4604_v26 = vpop.eup %4603 }
0x1f85   :  { %v5350_v28 = vadd.f32 %v3653_v2, %v5067_v54  ;;  %v3652_v30 = vmul.f32 %v4604_v26, %v3622_v48 }
0x1f87   :  { %4378 = vmatprep.mubr.msk.f32.mxu0 %vm175_vm2, %v5350_v28  ;;  %v3654_v31 = vmul.f32 %v3652_v30, %v5064_v51 }
0x1f89   :  { %v5356_v19 = vadd.f32 %v3654_v31, %v5067_v54 }
0x1f8b   :  { %4379 = vmatmul.mubr.msk.f32.vlgmr.msra.gmra.mrb[44].mxu0 %vm175_vm2, %v5356_v19 }
0x205e   :  { %v4380_v6 = vpop.f32.mrb[44].mxu0 }
0x205f   :  { %v3735_v36 = vadd.f32 %v4380_v6, %v5128_v14  ;;  %v3729_v46 = vpop.f32.mrb[45].mxu0 }
0x2060   :  { %v3730_v47 = vadd.f32 %v3729_v46, %v5128_v14 }
0x2061   :  { %v3741_v32 = vmul.f32 0.70710677, %v3735_v36  ;;  %v3739_v56 = vmul.f32 0.5, %v3735_v36 }
0x2062   :  { %v3740_v18 = vmul.f32 0.70710677, %v3730_v47  ;;  %v3738_v53 = vmul.f32 0.5, %v3730_v47 }
0x2063   :  { %v3747_v39 = vand.u32 2147483647, %v3741_v32  ;;  %vm3743_vm11 = vcmp.ge.f32.partialorder %v3741_v32, 0.0 }
0x2064   :  { %v3746_v25 = vand.u32 2147483647, %v3740_v18  ;;  %vm3742_vm12 = vcmp.ge.f32.partialorder %v3740_v18, 0.0  ;;  %v3745_v63 = vsel %vm3743_vm11, 1.0, %v4712_v13 }
0x2065   :  { %v3749_v0 = vmul.f32 0.3275911, %v3747_v39  ;;  %v3775_v54 = vsub.f32 0.0, %v3747_v39  ;;  %v3744_v8 = vsel %vm3742_vm12, 1.0, %v4712_v13 }
0x2066   :  { %v3748_v33 = vmul.f32 0.3275911, %v3746_v25  ;;  %v3774_v16 = vsub.f32 0.0, %v3746_v25 }
0x2067   :  { %v3751_v23 = vadd.f32 1.0, %v3749_v0  ;;  %v3777_v7 = vmul.f32 %v3775_v54, %v3747_v39 }
0x2068   :  { %v3750_v51 = vadd.f32 1.0, %v3748_v33  ;;  %v3776_v15 = vmul.f32 %v3774_v16, %v3746_v25 }
0x2069   :  { %4605 = vrcp.f32 %v3751_v23  ;;  %v3780_v14 = vmul.f32 1.442695, %v3777_v7 }
0x206a   :  { %4607 = vrcp.f32 %v3750_v51  ;;  %v3778_v5 = vmul.f32 1.442695, %v3776_v15 }
0x206b   :  { %4609 = vpow2.f32 %v3780_v14 }
0x206c   :  { %4611 = vpow2.f32 %v3778_v5 }
0x2073   :  { %v4606_v34 = vpop.eup %4605 }
0x2074   :  { %v4608_v35 = vpop.eup %4607  ;;  %v3757_v10 = vmul.f32 1.0614054, %v4606_v34 }
0x2075   :  { %v3756_v37 = vmul.f32 1.0614054, %v4608_v35  ;;  %v4610_v52 = vpop.eup %4609 }
0x2076   :  { %v3759_v38 = vadd.f32 -1.4531521, %v3757_v10  ;;  %v4612_v58 = vpop.eup %4611 }
0x2077   :  { %v3758_v40 = vadd.f32 -1.4531521, %v3756_v37 }
0x2078   :  { %v3761_v1 = vmul.f32 %v4606_v34, %v3759_v38 }
0x2079   :  { %v3760_v3 = vmul.f32 %v4608_v35, %v3758_v40 }
0x207a   :  { %v3763_v41 = vadd.f32 1.4214138, %v3761_v1 }
0x207b   :  { %v3762_v9 = vadd.f32 1.4214138, %v3760_v3 }
0x207c   :  { %v3765_v43 = vmul.f32 %v4606_v34, %v3763_v41 }
0x207d   :  { %v3764_v45 = vmul.f32 %v4608_v35, %v3762_v9 }
0x207e   :  { %v3767_v48 = vadd.f32 -0.28449672, %v3765_v43 }
0x207f   :  { %v3766_v12 = vadd.f32 -0.28449672, %v3764_v45 }
0x2080   :  { %v3769_v49 = vmul.f32 %v4606_v34, %v3767_v48 }
0x2081   :  { %v3768_v50 = vmul.f32 %v4608_v35, %v3766_v12 }
0x2082   :  { %v3771_v42 = vadd.f32 0.2548296, %v3769_v49 }
0x2083   :  { %v3770_v60 = vadd.f32 0.2548296, %v3768_v50 }
0x2084   :  { %v3773_v57 = vmul.f32 %v4606_v34, %v3771_v42 }
0x2085   :  { %v3772_v55 = vmul.f32 %v4608_v35, %v3770_v60 }
0x2086   :  { %v3783_v59 = vmul.f32 %v4610_v52, %v3773_v57 }
0x2087   :  { %v3782_v62 = vmul.f32 %v4612_v58, %v3772_v55 }
0x2088   :  { %v3785_v61 = vsub.f32 1.0, %v3783_v59 }
0x2089   :  { %v3784_v27 = vsub.f32 1.0, %v3782_v62 }
0x208a   :  { %v3787_v29 = vmul.f32 %v3785_v61, %v3745_v63 }
0x208b   :  { %v3786_v44 = vmul.f32 %v3784_v27, %v3744_v8 }
0x208c   :  { %v3789_v4 = vadd.f32 1.0, %v3787_v29 }
0x208d   :  { %v3788_v11 = vadd.f32 1.0, %v3786_v44 }
0x208e   :  { %v3791_v24 = vmul.f32 %v3789_v4, %v3739_v56 }
0x208f   :  { %v3790_v22 = vmul.f32 %v3788_v11, %v3738_v53 }
0x2091   :  { %4397 = vmatprep.mubr.msk.f32.mxu1 %vm1957_vm1, %v3790_v22 }
0x2092   :  { %4398 = vmatmul.mubr.msk.f32.vlgmr.msra.gmra.mrb[34].mxu1 %vm1957_vm1, %v3791_v24 }
0x2165   :  { %v4399_v2 = vpop.f32.mrb[34].mxu1 }
0x2166   :  { %v3870_v26 = vadd.f32 %v4399_v2, %v5140_v20  ;;  %v3864_v30 = vpop.f32.mrb[35].mxu1 }
0x2167   :  { %v3865_v31 = vadd.f32 %v3864_v30, %v5140_v20 }
0x2168   :  { %v3874_v6 = vadd.f32 %v3870_v26, %v5356_v19 }
0x2169   :  { %v3873_v13 = vadd.f32 %v3865_v31, %v5350_v28 }
0x216a   :  { %v3878_v46 = vsel %vm175_vm2, %v3874_v6, 0.0 }
0x216b   :  { %3879 = vadd.xlane.f32.xlu1 %v3878_v46  ;;  %v3875_v36 = vsel %vm175_vm2, %v3873_v13, 0.0 }
0x216c   :  { %3876 = vadd.xlane.f32.xlu0 %v3875_v36 }
0x21f8   :  { %v3880_v47 = vpop.xlane.xlu1 %3879 }
0x21f9   :  { %v3882_v32 = vmul.f32 0.03125, %v3880_v47  ;;  %v3877_v18 = vpop.xlane.xlu0 %3876 }
0x21fa   :  { %v3881_v39 = vmul.f32 0.03125, %v3877_v18 }
0x21fb   :  { %v3884_v25 = vsub.f32 %v3874_v6, %v3882_v32 }
0x21fc   :  { %v3883_v0 = vsub.f32 %v3873_v13, %v3881_v39 }
0x21fd   :  { %v3886_v33 = vmul.f32 %v3884_v25, %v3884_v25 }
0x21fe   :  { %v3885_v23 = vmul.f32 %v3883_v0, %v3883_v0 }
0x21ff   :  { %v3890_v20 = vsel %vm175_vm2, %v3886_v33, 0.0 }
0x2200   :  { %3891 = vadd.xlane.f32.xlu1 %v3890_v20  ;;  %v3887_v19 = vsel %vm175_vm2, %v3885_v23, 0.0 }
0x2201   :  { %3888 = vadd.xlane.f32.xlu0 %v3887_v19 }
0x228d   :  { %v3892_v28 = vpop.xlane.xlu1 %3891 }
0x228e   :  { %v3894_v51 = vmul.f32 0.03125, %v3892_v28  ;;  %v3889_v54 = vpop.xlane.xlu0 %3888 }
0x228f   :  { %v3893_v16 = vmul.f32 0.03125, %v3889_v54 }
0x2290   :  { %v3896_v34 = vadd.f32 1e-12, %v3894_v51 }
0x2291   :  { %v3895_v7 = vadd.f32 1e-12, %v3893_v16 }
0x2292   :  { %4613 = vrsqrt.f32 %v3896_v34  ;;  %vm3906_vm13 = vcmp.eq.f32.partialorder %v3896_v34, inf  ;;  %v3909_v37 = vand.u32 2147483648, %v3896_v34  ;;  %vm3908_vm14 = vcmp.eq.f32.partialorder %v3896_v34, 0.0 }
0x2293   :  { %4615 = vrsqrt.f32 %v3895_v7  ;;  %vm3899_vm15 = vcmp.eq.f32.partialorder %v3895_v7, inf  ;;  %v3902_v40 = vand.u32 2147483648, %v3895_v7  ;;  %vm3901_vm0 = vcmp.eq.f32.partialorder %v3895_v7, 0.0 }
0x229c   :  { %v4614_v35 = vpop.eup %4613 }
0x229d   :  { %v4616_v10 = vpop.eup %4615  ;;  %v3905_v15 = vmul.f32 %v4614_v35, %v3896_v34 }
0x229e   :  { %v3898_v38 = vmul.f32 %v4616_v10, %v3895_v7 }
0x229f   :  { %v3907_v14 = vsel %vm3906_vm13, %v3896_v34, %v3905_v15 }
0x22a0   :  { %v3910_v1 = vsel %vm3908_vm14, %v3909_v37, %v3907_v14  ;;  %v3900_v5 = vsel %vm3899_vm15, %v3895_v7, %v3898_v38 }
0x22a1   :  { %4617 = vrcp.f32 %v3910_v1  ;;  %v3903_v3 = vsel %vm3901_vm0, %v3902_v40, %v3900_v5 }
0x22a2   :  { %4619 = vrcp.f32 %v3903_v3 }
0x22ab   :  { %v4618_v41 = vpop.eup %4617 }
0x22ac   :  { %v4620_v9 = vpop.eup %4619  ;;  %v3914_v43 = vmul.f32 %v4618_v41, %v3884_v25 }
0x22ad   :  { %v3912_v45 = vmul.f32 %v4620_v9, %v3883_v0 }
0x22ae   :  { %v3916_v48 = vmul.f32 %v3914_v43, %v5152_v17 }
0x22af   :  { %v3915_v12 = vmul.f32 %v3912_v45, %v5152_v17 }
0x22b0   :  { %v3918_v49 = vadd.f32 %v3916_v48, %v5156_v21 }
0x22b1   :  { %v3917_v50 = vadd.f32 %v3915_v12, %v5156_v21 }
0x22b2   :  { %v3920_v42 = vsel %vm175_vm2, %v3918_v49, 0.0 }
0x22b3   :  { %v3919_v60 = vsel %vm175_vm2, %v3917_v50, 0.0  ;;  %3922 = vst [vmem:[#allocation7 + $0x8] sm:$0xff] %v3920_v42 }
0x22b4   :  { %3921 = vst [vmem:[#allocation7] sm:$0xff] %v3919_v60 }
0x22b5   :  { %4676 = shalt.err (!%p4673_p6)
}
0x22b6   :  { %s4677_s24 = scalar_lea.hbm %s5403_s8, 256 }
0x22b7   :  { %p4678_p7 = scmp.ne.s32.totalorder %s5403_s8, %s4677_s24  ;;  %p4681_p8 = scmp.lt.u32.totalorder %s4677_s24, %s5403_s8 }
0x22b9   :  { %p4683_p9 = pnand %p4681_p8, %p4678_p7 }
0x22bb   :  { %4686 = shalt.err (!%p4683_p9)
}
0x22bc   :  { %3934 = dma.vmem_to_hbm [thread:$0]  %s3929_s4, 256, %s5403_s8, [#allocation4], %s4694_s15, %s4694_s15, %s4695_s16  }
0x22bd   :  { %4691 = dma.done.wait [#allocation4], 256  }
0x22be   :  { %4692 = vsyncadd [#allocation4], 4294967040 }
0x22bf   :  { %3938 = vsyncpa [#allocation3], 1 }
0x22c0   :  { %3939 = vsyncpa [#allocation6], 1 }
0x22c1   :  { %3940 = vsyncpa [#allocation4], 1 }

</bundles_post_ra>
